<compile_context>
chip_gen: v7x
topology: tpu7x:2x2x1
jax: 0.10.0
libtpu: 0.0.40
codegen_flags: <defaults>
</compile_context>

<pallas_src>
import jax
import jax.numpy as jnp
import numpy as np
from jax.experimental import pallas as pl
from jax.experimental.pallas import tpu as pltpu

# ---------------- hyper-parameters (small, consistent with the module) -------------
NUM_ENT = 32          # len(d.entities)
NUM_REL = 8           # len(d.relations)
D1      = 200         # entity embedding dim; must equal 10*20 for .view(-1,1,10,20)
IN_C    = 1           # in_channels (the permute/group trick in forward requires 1)
OUT_C   = 4           # out_channels
FH, FW  = 3, 3        # filt_h, filt_w
H, W    = 10, 20
HP, WP  = H - FH + 1, W - FW + 1         # 8, 18
KSZ     = IN_C * OUT_C * FH * FW         # relation embedding dim (r_dim) = 36
FC_LEN  = HP * WP * OUT_C                # 576
EPS     = 1e-5
B       = 2           # batch size

LANE, SUBLANE = 128, 8
NUM_ENT_PAD = ((NUM_ENT + LANE - 1) // LANE) * LANE      # 128 (lane-dense output)
XIN     = 256         # flat image zero-padded to 2 full vregs of lanes
KVALID  = 160         # rows p = i*20+j, i<=7, cover every valid conv output pixel
SHIFTS  = tuple(fi * W + fj for fi in range(FH) for fj in range(FW))  # 0,1,2,20,...,42
BN_SCALE = 1.0 / np.sqrt(1.0 + EPS)      # eval-mode BN: gamma/sqrt(var+eps); shift = 0


def _round_up(n, m):
    return ((n + m - 1) // m) * m


# ---------------- deterministic parameter init + BN/layout folding ------------------
key = jax.random.PRNGKey(0)
k1, k2, k3, k4, k5, k6 = jax.random.split(key, 6)

std_E = (2.0 / (NUM_ENT + D1)) ** 0.5                    # xavier_normal_
E_w = (jax.random.normal(k1, (NUM_ENT, D1), jnp.float32) * std_E).at[0].set(0.0)
std_R = (2.0 / (NUM_REL + KSZ)) ** 0.5
R_w = (jax.random.normal(k2, (NUM_REL, KSZ), jnp.float32) * std_R).at[0].set(0.0)

bound = 1.0 / (FC_LEN ** 0.5)                            # torch Linear default-ish
W_fc = jax.random.uniform(k3, (D1, FC_LEN), jnp.float32, -bound, bound)   # (out, in)
b_fc = jax.random.uniform(k4, (D1,), jnp.float32, -bound, bound)
b_ent = jnp.zeros((NUM_ENT,), jnp.float32)               # self.b, init to zeros

# bn0 folded into the conv-input gather table; padded to XIN lanes so the wrapper
# gather directly produces the kernel's input layout (no runtime pad op).
E0_pad = jnp.zeros((NUM_ENT, XIN), jnp.float32).at[:, :D1].set(E_w * BN_SCALE)

# fc weight: fold bn1*bn2 scales, reorder NCHW-flat columns (oc*144 + i*18 + j) into
# per-out-channel rows p = i*20 + j (matching the shifted-slab feature layout), zero
# rows for the invalid window positions j in {18, 19}.  Stored bf16 (MXU operand).
_wfc = np.asarray(W_fc)                                  # (D1, FC_LEN)
_wocs = np.zeros((OUT_C, KVALID, D1), np.float32)
for _oc in range(OUT_C):
    for _i in range(HP):
        for _j in range(WP):
            _wocs[_oc, _i * W + _j, :] = _wfc[:, _oc * HP * WP + _i * WP + _j]
W_ocs = jnp.asarray(_wocs * (BN_SCALE * BN_SCALE)).astype(jnp.bfloat16)   # (4, 160, 200)

bfc_row  = (b_fc * BN_SCALE).reshape(1, D1)              # bn2 folded into fc bias (f32)
EwT_bf16 = (jnp.zeros((D1, NUM_ENT_PAD), jnp.float32)
            .at[:, :NUM_ENT].set(E_w.T)).astype(jnp.bfloat16)             # (200, 128)
bent_pad = jnp.zeros((1, NUM_ENT_PAD), jnp.float32).at[0, :NUM_ENT].set(b_ent)


# ---------------- fused kernel -------------------------------------------------------
def _hype_fused_kernel(x_ref, k_ref, w_ref, bfc_ref, ewt_ref, bent_ref, o_ref):
    # x_ref   : VMEM (Bp, XIN)   f32   bn0-folded flat 10x20 entity image, zero-padded
    # k_ref   : VMEM (Bp, KSZ)   f32   per-example filters, flat (oc, fi, fj) order
    # w_ref   : VMEM (OUT_C, KVALID, D1) bf16  bn-folded, reordered + masked fc weight
    # bfc_ref : VMEM (1, D1)     f32   bn-folded fc bias
    # ewt_ref : VMEM (D1, NUM_ENT_PAD) bf16  E^T (raw), zero-padded lanes
    # bent_ref: VMEM (1, NUM_ENT_PAD)  f32   entity bias, zero-padded
    # o_ref   : VMEM (Bp, NUM_ENT_PAD) f32   sigmoid scores (lane-dense)
    nbp = x_ref.shape[0]
    x = x_ref[...]
    k = k_ref[...]

    # 9 shifted full-width slabs: xs[t][b, p] == x[b, p + SHIFTS[t]].
    # Unaligned lane slices of a 2-vreg value lower to XLU lane shifts (VALU stays free).
    xs = [x[:, s:s + KVALID] for s in SHIFTS]

    # Grouped per-example conv + (bn1,bn2)-folded fc, one output channel at a time:
    # 9 full-width mul-adds per channel, then one (Bp,160)@(160,200) MXU pass.
    # Invalid window positions (j >= 18) hit zero weight rows, so no masking is needed.
    h = bfc_ref[...]                                           # (1, D1) -> broadcasts
    for oc in range(OUT_C):
        base = oc * FH * FW
        fm = xs[0] * jnp.broadcast_to(k[:, base:base + 1], (nbp, KVALID))
        for t in range(1, FH * FW):
            fm = fm + xs[t] * jnp.broadcast_to(k[:, base + t:base + t + 1], (nbp, KVALID))
        h = h + jnp.dot(fm.astype(jnp.bfloat16), w_ref[oc],
                        preferred_element_type=jnp.float32)

    h = jnp.maximum(h, 0.0)                                    # relu (dropouts = identity)

    # Score against all (padded) entities + bias + sigmoid (divide runs on the EUP).
    s = jnp.dot(h.astype(jnp.bfloat16), ewt_ref[...],
                preferred_element_type=jnp.float32) + bent_ref[...]
    o_ref[...] = pl.reciprocal(1.0 + jnp.exp(-s), approx=True)


def _fused_forward(nbp):
    vm = pltpu.MemorySpace.VMEM
    return pl.pallas_call(
        _hype_fused_kernel,
        out_shape=jax.ShapeDtypeStruct((nbp, NUM_ENT_PAD), jnp.float32),
        in_specs=[pl.BlockSpec(memory_space=vm) for _ in range(6)],
        out_specs=pl.BlockSpec(memory_space=vm),
    )


# ---------------- full forward ------------------------------------------------------
@jax.jit
def hype_forward(e1_idx, r_idx):
    nb = e1_idx.shape[0]
    nbp = max(SUBLANE, _round_up(nb, SUBLANE))       # pad batch to >= 8 sublanes
    e1p = jnp.pad(e1_idx, (0, nbp - nb))             # pad with entity 0 (padding row = 0)
    rp = jnp.pad(r_idx, (0, nbp - nb))
    x = E0_pad[e1p]                                  # (nbp, XIN) embedding gather (glue)
    k = R_w[rp]                                      # (nbp, KSZ) relation filters
    out = _fused_forward(nbp)(x, k, W_ocs, bfc_row, EwT_bf16, bent_pad)
    return out[:nb, :NUM_ENT]                        # strip batch / entity padding


# ---------------- pure numpy reference (eval-mode semantics) -------------------------
def reference_forward(e1_idx, r_idx):
    Ew = np.asarray(E_w); Rw = np.asarray(R_w)
    e1 = Ew[np.asarray(e1_idx)].reshape(-1, H, W).astype(np.float32) * BN_SCALE
    k = Rw[np.asarray(r_idx)].reshape(-1, OUT_C, FH, FW).astype(np.float32)
    nb = e1.shape[0]
    fmap = np.zeros((nb, OUT_C, HP, WP), np.float32)
    for b in range(nb):
        for oc in range(OUT_C):
            for fi in range(FH):
                for fj in range(FW):
                    fmap[b, oc] += e1[b, fi:fi + HP, fj:fj + WP] * k[b, oc, fi, fj]
    fmap *= BN_SCALE
    feat = fmap.reshape(nb, FC_LEN)
    h = feat @ np.asarray(W_fc).T + np.asarray(b_fc)
    h = np.maximum(h * BN_SCALE, 0.0)
    s = h @ Ew.T + np.asarray(b_ent)
    return 1.0 / (1.0 + np.exp(-s))


if __name__ == "__main__":
    e1_idx = jax.random.randint(k5, (B,), 0, NUM_ENT, dtype=jnp.int32)
    r_idx = jax.random.randint(k6, (B,), 0, NUM_REL, dtype=jnp.int32)

    pred = jax.block_until_ready(hype_forward(e1_idx, r_idx))
    ref = reference_forward(e1_idx, r_idx)
    assert pred.shape == (B, NUM_ENT)
    # bf16 MXU operands + approx reciprocal -> slightly looser tolerance than pure f32.
    np.testing.assert_allclose(np.asarray(pred), ref, rtol=5e-3, atol=5e-3)
    print("KERNEL_OK")
</pallas_src>

<mosaic_0001>
module attributes {stable_mosaic.version = 11 : i64} {
  func.func @_hype_fused_kernel(%arg0: memref<8x256xf32, #tpu.memory_space<vmem>>, %arg1: memref<8x36xf32, #tpu.memory_space<vmem>>, %arg2: memref<4x160x200xbf16, #tpu.memory_space<vmem>>, %arg3: memref<1x200xf32, #tpu.memory_space<vmem>>, %arg4: memref<200x128xbf16, #tpu.memory_space<vmem>>, %arg5: memref<1x128xf32, #tpu.memory_space<vmem>>, %arg6: memref<8x128xf32, #tpu.memory_space<vmem>>) attributes {dimension_semantics = [], scalar_prefetch = 0 : i64, scratch_operands = 0 : i64, tpu.core_type = #tpu.core_type<tc>} {
    %c0 = arith.constant 0 : index
    %c0_0 = arith.constant 0 : index
    %0 = vector.load %arg0[%c0, %c0_0] : memref<8x256xf32, #tpu.memory_space<vmem>>, vector<8x256xf32>
    %c0_1 = arith.constant 0 : index
    %c0_2 = arith.constant 0 : index
    %1 = vector.load %arg1[%c0_1, %c0_2] : memref<8x36xf32, #tpu.memory_space<vmem>>, vector<8x36xf32>
    %2 = vector.extract_strided_slice %0 {offsets = [0, 0], sizes = [8, 160], strides = [1, 1]} : vector<8x256xf32> to vector<8x160xf32>
    %3 = vector.extract_strided_slice %0 {offsets = [0, 1], sizes = [8, 160], strides = [1, 1]} : vector<8x256xf32> to vector<8x160xf32>
    %4 = vector.extract_strided_slice %0 {offsets = [0, 2], sizes = [8, 160], strides = [1, 1]} : vector<8x256xf32> to vector<8x160xf32>
    %5 = vector.extract_strided_slice %0 {offsets = [0, 20], sizes = [8, 160], strides = [1, 1]} : vector<8x256xf32> to vector<8x160xf32>
    %6 = vector.extract_strided_slice %0 {offsets = [0, 21], sizes = [8, 160], strides = [1, 1]} : vector<8x256xf32> to vector<8x160xf32>
    %7 = vector.extract_strided_slice %0 {offsets = [0, 22], sizes = [8, 160], strides = [1, 1]} : vector<8x256xf32> to vector<8x160xf32>
    %8 = vector.extract_strided_slice %0 {offsets = [0, 40], sizes = [8, 160], strides = [1, 1]} : vector<8x256xf32> to vector<8x160xf32>
    %9 = vector.extract_strided_slice %0 {offsets = [0, 41], sizes = [8, 160], strides = [1, 1]} : vector<8x256xf32> to vector<8x160xf32>
    %10 = vector.extract_strided_slice %0 {offsets = [0, 42], sizes = [8, 160], strides = [1, 1]} : vector<8x256xf32> to vector<8x160xf32>
    %c0_3 = arith.constant 0 : index
    %c0_4 = arith.constant 0 : index
    %11 = vector.load %arg3[%c0_3, %c0_4] : memref<1x200xf32, #tpu.memory_space<vmem>>, vector<1x200xf32>
    %12 = vector.extract_strided_slice %1 {offsets = [0, 0], sizes = [8, 1], strides = [1, 1]} : vector<8x36xf32> to vector<8x1xf32>
    %13 = vector.shape_cast %12 : vector<8x1xf32> to vector<8x1xf32>
    %14 = vector.broadcast %13 : vector<8x1xf32> to vector<8x160xf32>
    %15 = arith.mulf %2, %14 : vector<8x160xf32>
    %16 = vector.extract_strided_slice %1 {offsets = [0, 1], sizes = [8, 1], strides = [1, 1]} : vector<8x36xf32> to vector<8x1xf32>
    %17 = vector.shape_cast %16 : vector<8x1xf32> to vector<8x1xf32>
    %18 = vector.broadcast %17 : vector<8x1xf32> to vector<8x160xf32>
    %19 = arith.mulf %3, %18 : vector<8x160xf32>
    %20 = arith.addf %15, %19 : vector<8x160xf32>
    %21 = vector.extract_strided_slice %1 {offsets = [0, 2], sizes = [8, 1], strides = [1, 1]} : vector<8x36xf32> to vector<8x1xf32>
    %22 = vector.shape_cast %21 : vector<8x1xf32> to vector<8x1xf32>
    %23 = vector.broadcast %22 : vector<8x1xf32> to vector<8x160xf32>
    %24 = arith.mulf %4, %23 : vector<8x160xf32>
    %25 = arith.addf %20, %24 : vector<8x160xf32>
    %26 = vector.extract_strided_slice %1 {offsets = [0, 3], sizes = [8, 1], strides = [1, 1]} : vector<8x36xf32> to vector<8x1xf32>
    %27 = vector.shape_cast %26 : vector<8x1xf32> to vector<8x1xf32>
    %28 = vector.broadcast %27 : vector<8x1xf32> to vector<8x160xf32>
    %29 = arith.mulf %5, %28 : vector<8x160xf32>
    %30 = arith.addf %25, %29 : vector<8x160xf32>
    %31 = vector.extract_strided_slice %1 {offsets = [0, 4], sizes = [8, 1], strides = [1, 1]} : vector<8x36xf32> to vector<8x1xf32>
    %32 = vector.shape_cast %31 : vector<8x1xf32> to vector<8x1xf32>
    %33 = vector.broadcast %32 : vector<8x1xf32> to vector<8x160xf32>
    %34 = arith.mulf %6, %33 : vector<8x160xf32>
    %35 = arith.addf %30, %34 : vector<8x160xf32>
    %36 = vector.extract_strided_slice %1 {offsets = [0, 5], sizes = [8, 1], strides = [1, 1]} : vector<8x36xf32> to vector<8x1xf32>
    %37 = vector.shape_cast %36 : vector<8x1xf32> to vector<8x1xf32>
    %38 = vector.broadcast %37 : vector<8x1xf32> to vector<8x160xf32>
    %39 = arith.mulf %7, %38 : vector<8x160xf32>
    %40 = arith.addf %35, %39 : vector<8x160xf32>
    %41 = vector.extract_strided_slice %1 {offsets = [0, 6], sizes = [8, 1], strides = [1, 1]} : vector<8x36xf32> to vector<8x1xf32>
    %42 = vector.shape_cast %41 : vector<8x1xf32> to vector<8x1xf32>
    %43 = vector.broadcast %42 : vector<8x1xf32> to vector<8x160xf32>
    %44 = arith.mulf %8, %43 : vector<8x160xf32>
    %45 = arith.addf %40, %44 : vector<8x160xf32>
    %46 = vector.extract_strided_slice %1 {offsets = [0, 7], sizes = [8, 1], strides = [1, 1]} : vector<8x36xf32> to vector<8x1xf32>
    %47 = vector.shape_cast %46 : vector<8x1xf32> to vector<8x1xf32>
    %48 = vector.broadcast %47 : vector<8x1xf32> to vector<8x160xf32>
    %49 = arith.mulf %9, %48 : vector<8x160xf32>
    %50 = arith.addf %45, %49 : vector<8x160xf32>
    %51 = vector.extract_strided_slice %1 {offsets = [0, 8], sizes = [8, 1], strides = [1, 1]} : vector<8x36xf32> to vector<8x1xf32>
    %52 = vector.shape_cast %51 : vector<8x1xf32> to vector<8x1xf32>
    %53 = vector.broadcast %52 : vector<8x1xf32> to vector<8x160xf32>
    %54 = arith.mulf %10, %53 : vector<8x160xf32>
    %55 = arith.addf %50, %54 : vector<8x160xf32>
    %56 = arith.truncf %55 : vector<8x160xf32> to vector<8x160xbf16>
    %c0_5 = arith.constant 0 : index
    %c0_6 = arith.constant 0 : index
    %c0_7 = arith.constant 0 : index
    %57 = vector.load %arg2[%c0_5, %c0_6, %c0_7] : memref<4x160x200xbf16, #tpu.memory_space<vmem>>, vector<1x160x200xbf16>
    %58 = vector.shape_cast %57 : vector<1x160x200xbf16> to vector<160x200xbf16>
    %cst = arith.constant dense<0.000000e+00> : vector<8x200xf32>
    %59 = tpu.matmul %56, %58, %cst {dimension_numbers = #tpu.dot_dimension_numbers<[1], [0], [0], [1], [0, 0, 1, 1], [], []>} : vector<8x160xbf16>, vector<160x200xbf16>, vector<8x200xf32> -> vector<8x200xf32>
    %60 = vector.broadcast %11 : vector<1x200xf32> to vector<8x200xf32>
    %61 = arith.addf %60, %59 : vector<8x200xf32>
    %62 = vector.extract_strided_slice %1 {offsets = [0, 9], sizes = [8, 1], strides = [1, 1]} : vector<8x36xf32> to vector<8x1xf32>
    %63 = vector.shape_cast %62 : vector<8x1xf32> to vector<8x1xf32>
    %64 = vector.broadcast %63 : vector<8x1xf32> to vector<8x160xf32>
    %65 = arith.mulf %2, %64 : vector<8x160xf32>
    %66 = vector.extract_strided_slice %1 {offsets = [0, 10], sizes = [8, 1], strides = [1, 1]} : vector<8x36xf32> to vector<8x1xf32>
    %67 = vector.shape_cast %66 : vector<8x1xf32> to vector<8x1xf32>
    %68 = vector.broadcast %67 : vector<8x1xf32> to vector<8x160xf32>
    %69 = arith.mulf %3, %68 : vector<8x160xf32>
    %70 = arith.addf %65, %69 : vector<8x160xf32>
    %71 = vector.extract_strided_slice %1 {offsets = [0, 11], sizes = [8, 1], strides = [1, 1]} : vector<8x36xf32> to vector<8x1xf32>
    %72 = vector.shape_cast %71 : vector<8x1xf32> to vector<8x1xf32>
    %73 = vector.broadcast %72 : vector<8x1xf32> to vector<8x160xf32>
    %74 = arith.mulf %4, %73 : vector<8x160xf32>
    %75 = arith.addf %70, %74 : vector<8x160xf32>
    %76 = vector.extract_strided_slice %1 {offsets = [0, 12], sizes = [8, 1], strides = [1, 1]} : vector<8x36xf32> to vector<8x1xf32>
    %77 = vector.shape_cast %76 : vector<8x1xf32> to vector<8x1xf32>
    %78 = vector.broadcast %77 : vector<8x1xf32> to vector<8x160xf32>
    %79 = arith.mulf %5, %78 : vector<8x160xf32>
    %80 = arith.addf %75, %79 : vector<8x160xf32>
    %81 = vector.extract_strided_slice %1 {offsets = [0, 13], sizes = [8, 1], strides = [1, 1]} : vector<8x36xf32> to vector<8x1xf32>
    %82 = vector.shape_cast %81 : vector<8x1xf32> to vector<8x1xf32>
    %83 = vector.broadcast %82 : vector<8x1xf32> to vector<8x160xf32>
    %84 = arith.mulf %6, %83 : vector<8x160xf32>
    %85 = arith.addf %80, %84 : vector<8x160xf32>
    %86 = vector.extract_strided_slice %1 {offsets = [0, 14], sizes = [8, 1], strides = [1, 1]} : vector<8x36xf32> to vector<8x1xf32>
    %87 = vector.shape_cast %86 : vector<8x1xf32> to vector<8x1xf32>
    %88 = vector.broadcast %87 : vector<8x1xf32> to vector<8x160xf32>
    %89 = arith.mulf %7, %88 : vector<8x160xf32>
    %90 = arith.addf %85, %89 : vector<8x160xf32>
    %91 = vector.extract_strided_slice %1 {offsets = [0, 15], sizes = [8, 1], strides = [1, 1]} : vector<8x36xf32> to vector<8x1xf32>
    %92 = vector.shape_cast %91 : vector<8x1xf32> to vector<8x1xf32>
    %93 = vector.broadcast %92 : vector<8x1xf32> to vector<8x160xf32>
    %94 = arith.mulf %8, %93 : vector<8x160xf32>
    %95 = arith.addf %90, %94 : vector<8x160xf32>
    %96 = vector.extract_strided_slice %1 {offsets = [0, 16], sizes = [8, 1], strides = [1, 1]} : vector<8x36xf32> to vector<8x1xf32>
    %97 = vector.shape_cast %96 : vector<8x1xf32> to vector<8x1xf32>
    %98 = vector.broadcast %97 : vector<8x1xf32> to vector<8x160xf32>
    %99 = arith.mulf %9, %98 : vector<8x160xf32>
    %100 = arith.addf %95, %99 : vector<8x160xf32>
    %101 = vector.extract_strided_slice %1 {offsets = [0, 17], sizes = [8, 1], strides = [1, 1]} : vector<8x36xf32> to vector<8x1xf32>
    %102 = vector.shape_cast %101 : vector<8x1xf32> to vector<8x1xf32>
    %103 = vector.broadcast %102 : vector<8x1xf32> to vector<8x160xf32>
    %104 = arith.mulf %10, %103 : vector<8x160xf32>
    %105 = arith.addf %100, %104 : vector<8x160xf32>
    %106 = arith.truncf %105 : vector<8x160xf32> to vector<8x160xbf16>
    %c1 = arith.constant 1 : index
    %c0_8 = arith.constant 0 : index
    %c0_9 = arith.constant 0 : index
    %107 = vector.load %arg2[%c1, %c0_8, %c0_9] : memref<4x160x200xbf16, #tpu.memory_space<vmem>>, vector<1x160x200xbf16>
    %108 = vector.shape_cast %107 : vector<1x160x200xbf16> to vector<160x200xbf16>
    %cst_10 = arith.constant dense<0.000000e+00> : vector<8x200xf32>
    %109 = tpu.matmul %106, %108, %cst_10 {dimension_numbers = #tpu.dot_dimension_numbers<[1], [0], [0], [1], [0, 0, 1, 1], [], []>} : vector<8x160xbf16>, vector<160x200xbf16>, vector<8x200xf32> -> vector<8x200xf32>
    %110 = arith.addf %61, %109 : vector<8x200xf32>
    %111 = vector.extract_strided_slice %1 {offsets = [0, 18], sizes = [8, 1], strides = [1, 1]} : vector<8x36xf32> to vector<8x1xf32>
    %112 = vector.shape_cast %111 : vector<8x1xf32> to vector<8x1xf32>
    %113 = vector.broadcast %112 : vector<8x1xf32> to vector<8x160xf32>
    %114 = arith.mulf %2, %113 : vector<8x160xf32>
    %115 = vector.extract_strided_slice %1 {offsets = [0, 19], sizes = [8, 1], strides = [1, 1]} : vector<8x36xf32> to vector<8x1xf32>
    %116 = vector.shape_cast %115 : vector<8x1xf32> to vector<8x1xf32>
    %117 = vector.broadcast %116 : vector<8x1xf32> to vector<8x160xf32>
    %118 = arith.mulf %3, %117 : vector<8x160xf32>
    %119 = arith.addf %114, %118 : vector<8x160xf32>
    %120 = vector.extract_strided_slice %1 {offsets = [0, 20], sizes = [8, 1], strides = [1, 1]} : vector<8x36xf32> to vector<8x1xf32>
    %121 = vector.shape_cast %120 : vector<8x1xf32> to vector<8x1xf32>
    %122 = vector.broadcast %121 : vector<8x1xf32> to vector<8x160xf32>
    %123 = arith.mulf %4, %122 : vector<8x160xf32>
    %124 = arith.addf %119, %123 : vector<8x160xf32>
    %125 = vector.extract_strided_slice %1 {offsets = [0, 21], sizes = [8, 1], strides = [1, 1]} : vector<8x36xf32> to vector<8x1xf32>
    %126 = vector.shape_cast %125 : vector<8x1xf32> to vector<8x1xf32>
    %127 = vector.broadcast %126 : vector<8x1xf32> to vector<8x160xf32>
    %128 = arith.mulf %5, %127 : vector<8x160xf32>
    %129 = arith.addf %124, %128 : vector<8x160xf32>
    %130 = vector.extract_strided_slice %1 {offsets = [0, 22], sizes = [8, 1], strides = [1, 1]} : vector<8x36xf32> to vector<8x1xf32>
    %131 = vector.shape_cast %130 : vector<8x1xf32> to vector<8x1xf32>
    %132 = vector.broadcast %131 : vector<8x1xf32> to vector<8x160xf32>
    %133 = arith.mulf %6, %132 : vector<8x160xf32>
    %134 = arith.addf %129, %133 : vector<8x160xf32>
    %135 = vector.extract_strided_slice %1 {offsets = [0, 23], sizes = [8, 1], strides = [1, 1]} : vector<8x36xf32> to vector<8x1xf32>
    %136 = vector.shape_cast %135 : vector<8x1xf32> to vector<8x1xf32>
    %137 = vector.broadcast %136 : vector<8x1xf32> to vector<8x160xf32>
    %138 = arith.mulf %7, %137 : vector<8x160xf32>
    %139 = arith.addf %134, %138 : vector<8x160xf32>
    %140 = vector.extract_strided_slice %1 {offsets = [0, 24], sizes = [8, 1], strides = [1, 1]} : vector<8x36xf32> to vector<8x1xf32>
    %141 = vector.shape_cast %140 : vector<8x1xf32> to vector<8x1xf32>
    %142 = vector.broadcast %141 : vector<8x1xf32> to vector<8x160xf32>
    %143 = arith.mulf %8, %142 : vector<8x160xf32>
    %144 = arith.addf %139, %143 : vector<8x160xf32>
    %145 = vector.extract_strided_slice %1 {offsets = [0, 25], sizes = [8, 1], strides = [1, 1]} : vector<8x36xf32> to vector<8x1xf32>
    %146 = vector.shape_cast %145 : vector<8x1xf32> to vector<8x1xf32>
    %147 = vector.broadcast %146 : vector<8x1xf32> to vector<8x160xf32>
    %148 = arith.mulf %9, %147 : vector<8x160xf32>
    %149 = arith.addf %144, %148 : vector<8x160xf32>
    %150 = vector.extract_strided_slice %1 {offsets = [0, 26], sizes = [8, 1], strides = [1, 1]} : vector<8x36xf32> to vector<8x1xf32>
    %151 = vector.shape_cast %150 : vector<8x1xf32> to vector<8x1xf32>
    %152 = vector.broadcast %151 : vector<8x1xf32> to vector<8x160xf32>
    %153 = arith.mulf %10, %152 : vector<8x160xf32>
    %154 = arith.addf %149, %153 : vector<8x160xf32>
    %155 = arith.truncf %154 : vector<8x160xf32> to vector<8x160xbf16>
    %c2 = arith.constant 2 : index
    %c0_11 = arith.constant 0 : index
    %c0_12 = arith.constant 0 : index
    %156 = vector.load %arg2[%c2, %c0_11, %c0_12] : memref<4x160x200xbf16, #tpu.memory_space<vmem>>, vector<1x160x200xbf16>
    %157 = vector.shape_cast %156 : vector<1x160x200xbf16> to vector<160x200xbf16>
    %cst_13 = arith.constant dense<0.000000e+00> : vector<8x200xf32>
    %158 = tpu.matmul %155, %157, %cst_13 {dimension_numbers = #tpu.dot_dimension_numbers<[1], [0], [0], [1], [0, 0, 1, 1], [], []>} : vector<8x160xbf16>, vector<160x200xbf16>, vector<8x200xf32> -> vector<8x200xf32>
    %159 = arith.addf %110, %158 : vector<8x200xf32>
    %160 = vector.extract_strided_slice %1 {offsets = [0, 27], sizes = [8, 1], strides = [1, 1]} : vector<8x36xf32> to vector<8x1xf32>
    %161 = vector.shape_cast %160 : vector<8x1xf32> to vector<8x1xf32>
    %162 = vector.broadcast %161 : vector<8x1xf32> to vector<8x160xf32>
    %163 = arith.mulf %2, %162 : vector<8x160xf32>
    %164 = vector.extract_strided_slice %1 {offsets = [0, 28], sizes = [8, 1], strides = [1, 1]} : vector<8x36xf32> to vector<8x1xf32>
    %165 = vector.shape_cast %164 : vector<8x1xf32> to vector<8x1xf32>
    %166 = vector.broadcast %165 : vector<8x1xf32> to vector<8x160xf32>
    %167 = arith.mulf %3, %166 : vector<8x160xf32>
    %168 = arith.addf %163, %167 : vector<8x160xf32>
    %169 = vector.extract_strided_slice %1 {offsets = [0, 29], sizes = [8, 1], strides = [1, 1]} : vector<8x36xf32> to vector<8x1xf32>
    %170 = vector.shape_cast %169 : vector<8x1xf32> to vector<8x1xf32>
    %171 = vector.broadcast %170 : vector<8x1xf32> to vector<8x160xf32>
    %172 = arith.mulf %4, %171 : vector<8x160xf32>
    %173 = arith.addf %168, %172 : vector<8x160xf32>
    %174 = vector.extract_strided_slice %1 {offsets = [0, 30], sizes = [8, 1], strides = [1, 1]} : vector<8x36xf32> to vector<8x1xf32>
    %175 = vector.shape_cast %174 : vector<8x1xf32> to vector<8x1xf32>
    %176 = vector.broadcast %175 : vector<8x1xf32> to vector<8x160xf32>
    %177 = arith.mulf %5, %176 : vector<8x160xf32>
    %178 = arith.addf %173, %177 : vector<8x160xf32>
    %179 = vector.extract_strided_slice %1 {offsets = [0, 31], sizes = [8, 1], strides = [1, 1]} : vector<8x36xf32> to vector<8x1xf32>
    %180 = vector.shape_cast %179 : vector<8x1xf32> to vector<8x1xf32>
    %181 = vector.broadcast %180 : vector<8x1xf32> to vector<8x160xf32>
    %182 = arith.mulf %6, %181 : vector<8x160xf32>
    %183 = arith.addf %178, %182 : vector<8x160xf32>
    %184 = vector.extract_strided_slice %1 {offsets = [0, 32], sizes = [8, 1], strides = [1, 1]} : vector<8x36xf32> to vector<8x1xf32>
    %185 = vector.shape_cast %184 : vector<8x1xf32> to vector<8x1xf32>
    %186 = vector.broadcast %185 : vector<8x1xf32> to vector<8x160xf32>
    %187 = arith.mulf %7, %186 : vector<8x160xf32>
    %188 = arith.addf %183, %187 : vector<8x160xf32>
    %189 = vector.extract_strided_slice %1 {offsets = [0, 33], sizes = [8, 1], strides = [1, 1]} : vector<8x36xf32> to vector<8x1xf32>
    %190 = vector.shape_cast %189 : vector<8x1xf32> to vector<8x1xf32>
    %191 = vector.broadcast %190 : vector<8x1xf32> to vector<8x160xf32>
    %192 = arith.mulf %8, %191 : vector<8x160xf32>
    %193 = arith.addf %188, %192 : vector<8x160xf32>
    %194 = vector.extract_strided_slice %1 {offsets = [0, 34], sizes = [8, 1], strides = [1, 1]} : vector<8x36xf32> to vector<8x1xf32>
    %195 = vector.shape_cast %194 : vector<8x1xf32> to vector<8x1xf32>
    %196 = vector.broadcast %195 : vector<8x1xf32> to vector<8x160xf32>
    %197 = arith.mulf %9, %196 : vector<8x160xf32>
    %198 = arith.addf %193, %197 : vector<8x160xf32>
    %199 = vector.extract_strided_slice %1 {offsets = [0, 35], sizes = [8, 1], strides = [1, 1]} : vector<8x36xf32> to vector<8x1xf32>
    %200 = vector.shape_cast %199 : vector<8x1xf32> to vector<8x1xf32>
    %201 = vector.broadcast %200 : vector<8x1xf32> to vector<8x160xf32>
    %202 = arith.mulf %10, %201 : vector<8x160xf32>
    %203 = arith.addf %198, %202 : vector<8x160xf32>
    %204 = arith.truncf %203 : vector<8x160xf32> to vector<8x160xbf16>
    %c3 = arith.constant 3 : index
    %c0_14 = arith.constant 0 : index
    %c0_15 = arith.constant 0 : index
    %205 = vector.load %arg2[%c3, %c0_14, %c0_15] : memref<4x160x200xbf16, #tpu.memory_space<vmem>>, vector<1x160x200xbf16>
    %206 = vector.shape_cast %205 : vector<1x160x200xbf16> to vector<160x200xbf16>
    %cst_16 = arith.constant dense<0.000000e+00> : vector<8x200xf32>
    %207 = tpu.matmul %204, %206, %cst_16 {dimension_numbers = #tpu.dot_dimension_numbers<[1], [0], [0], [1], [0, 0, 1, 1], [], []>} : vector<8x160xbf16>, vector<160x200xbf16>, vector<8x200xf32> -> vector<8x200xf32>
    %208 = arith.addf %159, %207 : vector<8x200xf32>
    %cst_17 = arith.constant 0.000000e+00 : f32
    %209 = vector.broadcast %cst_17 : f32 to vector<8x200xf32>
    %210 = arith.maximumf %208, %209 : vector<8x200xf32>
    %211 = arith.truncf %210 : vector<8x200xf32> to vector<8x200xbf16>
    %c0_18 = arith.constant 0 : index
    %c0_19 = arith.constant 0 : index
    %212 = vector.load %arg4[%c0_18, %c0_19] : memref<200x128xbf16, #tpu.memory_space<vmem>>, vector<200x128xbf16>
    %cst_20 = arith.constant dense<0.000000e+00> : vector<8x128xf32>
    %213 = tpu.matmul %211, %212, %cst_20 {dimension_numbers = #tpu.dot_dimension_numbers<[1], [0], [0], [1], [0, 0, 1, 1], [], []>} : vector<8x200xbf16>, vector<200x128xbf16>, vector<8x128xf32> -> vector<8x128xf32>
    %c0_21 = arith.constant 0 : index
    %c0_22 = arith.constant 0 : index
    %214 = vector.load %arg5[%c0_21, %c0_22] : memref<1x128xf32, #tpu.memory_space<vmem>>, vector<1x128xf32>
    %215 = vector.broadcast %214 : vector<1x128xf32> to vector<8x128xf32>
    %216 = arith.addf %213, %215 : vector<8x128xf32>
    %cst_23 = arith.constant 0.000000e+00 : f32
    %217 = vector.broadcast %cst_23 : f32 to vector<8x128xf32>
    %218 = arith.subf %217, %216 : vector<8x128xf32>
    %219 = math.exp %218 : vector<8x128xf32>
    %cst_24 = arith.constant 1.000000e+00 : f32
    %220 = vector.broadcast %cst_24 : f32 to vector<8x128xf32>
    %221 = arith.addf %220, %219 : vector<8x128xf32>
    %222 = tpu.reciprocal %221 {approx = true} : vector<8x128xf32> -> vector<8x128xf32>
    %c0_25 = arith.constant 0 : index
    %c0_26 = arith.constant 0 : index
    %223 = vector.load %arg6[%c0_25, %c0_26] : memref<8x128xf32, #tpu.memory_space<vmem>>, vector<8x128xf32>
    tpu.vector_store %arg6[%c0_25, %c0_26], %222 {strides = array<i32>} : memref<8x128xf32, #tpu.memory_space<vmem>>, vector<8x128xf32>,
    return
  }
}

</mosaic_0001>

<bundles_post_ra>
// kernel: hype_forward.1
= control target key start
LH: loop header
LB: loop body
LE: loop exit
PB: predicated region body
PF: predicated region fallthrough
CT: control target
= control target key end

     0   :  { %v1852_v0 = vmov 10   ;;  %v1853_v1 = vmov 12   ;;  %v1854_v3 = vmov 11   ;;  %v1855_v4 = vmov 13   ;;  %s1888_s18 = smov 127   ;;  %s1890_s27 = smov 108   ;;  %s2537_s1 = inlined_call_operand.vmem [shape: f32[8,36], index: 1, kind: input, shape index: {}]   ;;  %s2538_s2 = inlined_call_operand.vmem [shape: bf16[4,160,200], index: 2, kind: input, shape index: {}]   ;;  %s2539_s0 = inlined_call_operand.vmem [shape: f32[8,256], index: 0, kind: input, shape index: {}]   ;;  %s2540_s4 = inlined_call_operand.vmem [shape: bf16[200,128], index: 4, kind: input, shape index: {}]   ;;  %s2541_s3 = inlined_call_operand.vmem [shape: f32[1,200], index: 3, kind: input, shape index: {}]   ;;  %s2542_s5 = inlined_call_operand.vmem [shape: f32[1,128], index: 5, kind: input, shape index: {}]   ;;  %s2543_s6 = inlined_call_operand.vmem [shape: f32[8,128], index: 6, kind: output, shape index: {}]  }
   0x1   :  { %1676 = vset.pattern.permute.xlu0 %v1852_v0  ;;  %1678 = vset.pattern.permute.xlu1 %v1853_v1  ;;  %v1934_v2 = vld [vmem:[%s2537_s1] sm:$0xff]  ;;  %v1856_v5 = vmov 14   ;;  %v1857_v6 = vmov 15   ;;  %v1858_v7 = vmov 16   ;;  %v1859_v8 = vmov 19   ;;  %v1992_v42 = vld [vmem:[%s2539_s0 + $0x8] sm:$0xff] }
   0x2   :  { %366 = vperm.xlu0 %1676, %v1934_v2   ;;  %400 = vperm.xlu1 %1678, %v1934_v2   ;;  %v1860_v9 = vmov 17   ;;  %v1861_v10 = vmov 22   ;;  %v1862_v11 = vmov 20   ;;  %v1863_v12 = vmov 25   ;;  %v1713_v37 = vld [vmem:[%s2538_s2 + $0xa4] ss:$8 sps:$4 sm:$0xff]  }
   0x3   :  { %v1864_v13 = vmov 21   ;;  %v1865_v14 = vmov 1   ;;  %v1866_v15 = vmov 23   ;;  %v1867_v16 = vmov 2   ;;  %v1715_v38 = vld [vmem:[%s2538_s2 + $0xa0] ss:$8 sps:$4 sm:$0xff]   ;;  %627 = vmatprep.subr.bf16.mxu0 %v1713_v37 }
   0x4   :  { %v1868_v17 = vmov 24   ;;  %v1869_v18 = vmov 28   ;;  %v1870_v19 = vmov 26   ;;  %v1871_v20 = vmov 4   ;;  %628 = vmatpush1.bf16.msra.mxu0 %v1715_v38  ;;  %v1716_v39 = vld [vmem:[%s2538_s2 + $0xb4] ss:$8 sps:$4 sm:$0xff]  }
   0x5   :  { %v1872_v21 = vmov 9   ;;  %v1873_v22 = vmov 31   ;;  %v1874_v23 = vmov 3   ;;  %v1875_v24 = vmov 7   ;;  %v1718_v40 = vld [vmem:[%s2538_s2 + $0xb0] ss:$8 sps:$4 sm:$0xff]   ;;  %629 = vmatprep.subr.bf16.mxu0 %v1716_v39 }
   0x6   :  { %1677 = vset.pattern.permute.xlu0 %v1854_v3  ;;  %1679 = vset.pattern.permute.xlu1 %v1855_v4  ;;  %v1876_v25 = vmov 29   ;;  %v1877_v26 = vmov 34   ;;  %v1878_v27 = vmov 30   ;;  %v1879_v28 = vmov 0   ;;  %v1987_v41 = vld [vmem:[%s2539_s0] sm:$0xff]  ;;  %s1889_s1 = smov 126  }
   0x7   :  { %383 = vperm.xlu0 %1677, %v1934_v2   ;;  %417 = vperm.xlu1 %1679, %v1934_v2   ;;  %v1880_v29 = vmov 5   ;;  %v1881_v30 = vmov 6   ;;  %v1882_v31 = vmov 32   ;;  %v1883_v32 = vmov 33   ;;  %v1719_v43 = vld [vmem:[%s2538_s2 + $0xc4] ss:$8 sps:$4 sm:$0xff]  }
   0x8   :  { %v1884_v33 = vmov 8   ;;  %v1885_v34 = vmov 35   ;;  %v1886_v35 = vmov 18   ;;  %v1887_v36 = vmov 27   ;;  %630 = vmatpush1.bf16.msra.mxu0 %v1718_v40  ;;  %v1721_v44 = vld [vmem:[%s2538_s2 + $0xc0] ss:$8 sps:$4 sm:$0xff]  }
   0x9   :  { %631 = vmatprep.subr.bf16.mxu0 %v1719_v43  ;;  %v1722_v49 = vld [vmem:[%s2538_s2 + $0xd4] ss:$8 sps:$4 sm:$0xff]   ;;  %v1724_v50 = vld [vmem:[%s2538_s2 + $0xd0] ss:$8 sps:$4 sm:$0xff]   ;;  %v1725_v53 = vld [vmem:[%s2538_s2 + $0xe4] ss:$8 sps:$4 sm:$0xff]  }
   0xa   :  { %v1727_v56 = vld [vmem:[%s2538_s2 + $0xe0] ss:$8 sps:$4 sm:$0xff]   ;;  %v1728_v57 = vld [vmem:[%s2538_s2 + $0xf4] ss:$8 sps:$4 sm:$0xff]   ;;  %v1730_v61 = vld [vmem:[%s2538_s2 + $0xf0] ss:$8 sps:$4 sm:$0xff]  }
   0xb   :  { %1680 = vset.pattern.permute.xlu1 %v1856_v5  ;;  %1681 = vset.pattern.permute.xlu0 %v1857_v6  ;;  %v1731_v0 = vld [vmem:[%s2538_s2 + $0x104] ss:$8 sps:$4 sm:$0xff]   ;;  %v1733_v1 = vld [vmem:[%s2538_s2 + $0x100] ss:$8 sps:$4 sm:$0xff]   ;;  %s1891_s8 = smov 107   ;;  %s1892_s13 = smov 106  }
   0xc   :  { %434 = vperm.xlu1 %1680, %v1934_v2   ;;  %451 = vperm.xlu0 %1681, %v1934_v2   ;;  %s1893_s19 = smov 88   ;;  %s1894_s20 = smov 86   ;;  %vm47_vm0 = vcmask 1039360   ;;  %vm65_vm1 = vcmask 1031168   ;;  %vm83_vm2 = vcmask 883712   ;;  %vm101_vm3 = vcmask 875520  }
   0xd   :  { %632 = vmatpush1.bf16.msra.mxu0 %v1721_v44  ;;  %s1895_s28 = smov 87   ;;  %vm119_vm4 = vcmask 867328   ;;  %vm137_vm5 = vcmask 719872   ;;  %vm155_vm6 = vcmask 711680   ;;  %vm173_vm7 = vcmask 703488  }
   0xe   :  { %633 = vmatprep.subr.bf16.mxu0 %v1722_v49  ;;  %vm301_vm8 = vcmask 261120   ;;  %vm1407_vm9 = vcmask 1043456   ;;  %vm1403_vm10 = vcmask 588800  }
  0x10   :  { %1682 = vset.pattern.permute.xlu1 %v1858_v7  ;;  %1684 = vset.pattern.permute.xlu0 %v1859_v8  ;;  %v1734_v7 = vld [vmem:[%s2538_s2 + $0x114] ss:$8 sps:$4 sm:$0xff]   ;;  %v1736_v8 = vld [vmem:[%s2538_s2 + $0x110] ss:$8 sps:$4 sm:$0xff]  }
  0x11   :  { %468 = vperm.xlu1 %1682, %v1934_v2   ;;  %677 = vperm.xlu0 %1684, %v1934_v2  }
  0x12   :  { %634 = vmatpush1.bf16.msra.mxu0 %v1724_v50 }
  0x13   :  { %635 = vmatprep.subr.bf16.mxu0 %v1725_v53 }
  0x15   :  { %1683 = vset.pattern.permute.xlu1 %v1860_v9  ;;  %1687 = vset.pattern.permute.xlu0 %v1861_v10 }
  0x16   :  { %485 = vperm.xlu1 %1683, %v1934_v2   ;;  %728 = vperm.xlu0 %1687, %v1934_v2  }
  0x17   :  { %636 = vmatpush1.bf16.msra.mxu0 %v1727_v56 }
  0x18   :  { %637 = vmatprep.subr.bf16.mxu0 %v1728_v57 }
  0x1a   :  { %1685 = vset.pattern.permute.xlu1 %v1862_v11  ;;  %1690 = vset.pattern.permute.xlu0 %v1863_v12 }
  0x1b   :  { %694 = vperm.xlu1 %1685, %v1934_v2   ;;  %779 = vperm.xlu0 %1690, %v1934_v2  }
  0x1c   :  { %638 = vmatpush1.bf16.msra.mxu0 %v1730_v61 }
  0x1d   :  { %639 = vmatprep.subr.bf16.mxu0 %v1731_v0 }
  0x1f   :  { %1686 = vset.pattern.permute.xlu1 %v1864_v13  ;;  %1693 = vset.pattern.permute.xlu0 %v1865_v14  ;;  %v1737_v13 = vld [vmem:[%s2538_s2 + $0x124] ss:$8 sps:$4 sm:$0xff]   ;;  %v1739_v14 = vld [vmem:[%s2538_s2 + $0x120] ss:$8 sps:$4 sm:$0xff]  }
  0x20   :  { %711 = vperm.xlu1 %1686, %v1934_v2   ;;  %36 = vperm.xlu0 %1693, %v1934_v2  }
  0x21   :  { %640 = vmatpush1.bf16.msra.mxu0 %v1733_v1 }
  0x22   :  { %641 = vmatprep.subr.bf16.mxu0 %v1734_v7 }
  0x24   :  { %1688 = vset.pattern.permute.xlu1 %v1866_v15  ;;  %1694 = vset.pattern.permute.xlu0 %v1867_v16 }
  0x25   :  { %745 = vperm.xlu1 %1688, %v1934_v2   ;;  %54 = vperm.xlu0 %1694, %v1934_v2  }
  0x26   :  { %642 = vmatpush1.bf16.msra.mxu0 %v1736_v8 }
  0x27   :  { %643 = vmatprep.subr.bf16.mxu0 %v1737_v13  ;;  %v1773_v13 = vld [vmem:[%s2538_s2 + $0x4] ss:$8 sps:$4 sm:$0xff]  }
  0x28   :  { %305 = vmatprep.subr.bf16.mxu1 %v1773_v13 }
  0x29   :  { %1689 = vset.pattern.permute.xlu1 %v1868_v17  ;;  %1695 = vset.pattern.permute.xlu0 %v1869_v18  ;;  %v1740_v17 = vld [vmem:[%s2538_s2 + $0x134] ss:$8 sps:$4 sm:$0xff]  }
  0x2a   :  { %762 = vperm.xlu1 %1689, %v1934_v2   ;;  %988 = vperm.xlu0 %1695, %v1934_v2  }
  0x2b   :  { %644 = vmatpush1.bf16.msra.mxu0 %v1739_v14  ;;  %v1775_v14 = vld [vmem:[%s2538_s2] ss:$8 sps:$4 sm:$0xff]  }
  0x2c   :  { %645 = vmatprep.subr.bf16.mxu0 %v1740_v17  ;;  %306 = vmatpush1.bf16.msra.mxu1 %v1775_v14  ;;  %v1776_v17 = vld [vmem:[%s2538_s2 + $0x14] ss:$8 sps:$4 sm:$0xff]  }
  0x2d   :  { %307 = vmatprep.subr.bf16.mxu1 %v1776_v17 }
  0x2e   :  { %1691 = vset.pattern.permute.xlu1 %v1870_v19  ;;  %1698 = vset.pattern.permute.xlu0 %v1871_v20  ;;  %v1742_v19 = vld [vmem:[%s2538_s2 + $0x130] ss:$8 sps:$4 sm:$0xff]  }
  0x2f   :  { %796 = vperm.xlu1 %1691, %v1934_v2   ;;  %90 = vperm.xlu0 %1698, %v1934_v2  }
  0x30   :  { %646 = vmatpush1.bf16.msra.mxu0 %v1742_v19  ;;  %v1778_v19 = vld [vmem:[%s2538_s2 + $0x10] ss:$8 sps:$4 sm:$0xff]  }
  0x31   :  { %308 = vmatpush1.bf16.msra.mxu1 %v1778_v19 }
  0x33   :  { %1692 = vset.pattern.permute.xlu1 %v1872_v21  ;;  %1701 = vset.pattern.permute.xlu0 %v1873_v22  ;;  %v1745_v22 = vld [vmem:[%s2538_s2 + $0x144] ss:$8 sps:$4 sm:$0xff]  }
  0x34   :  { %360 = vperm.xlu1 %1692, %v1934_v2   ;;  %1039 = vperm.xlu0 %1701, %v1934_v2  }
  0x35   :  { %938 = vmatprep.subr.bf16.mxu0 %v1745_v22  ;;  %v1779_v22 = vld [vmem:[%s2538_s2 + $0x24] ss:$8 sps:$4 sm:$0xff]  }
  0x36   :  { %309 = vmatprep.subr.bf16.mxu1 %v1779_v22 }
  0x38   :  { %1696 = vset.pattern.permute.xlu1 %v1874_v23  ;;  %1704 = vset.pattern.permute.xlu0 %v1875_v24 }
  0x39   :  { %72 = vperm.xlu1 %1696, %v1934_v2   ;;  %144 = vperm.xlu0 %1704, %v1934_v2  }
  0x3d   :  { %1697 = vset.pattern.permute.xlu1 %v1876_v25  ;;  %1707 = vset.pattern.permute.xlu0 %v1877_v26 }
  0x3e   :  { %1005 = vperm.xlu1 %1697, %v1934_v2   ;;  %1090 = vperm.xlu0 %1707, %v1934_v2  }
  0x42   :  { %1699 = vset.pattern.permute.xlu1 %v1878_v27  ;;  %1710 = vset.pattern.permute.xlu0 %v1879_v28 }
  0x43   :  { %1022 = vperm.xlu1 %1699, %v1934_v2  }
  0x47   :  { %1700 = vset.pattern.permute.xlu1 %v1880_v29 }
  0x48   :  { %108 = vperm.xlu1 %1700, %v1934_v2  }
  0x4c   :  { %1702 = vset.pattern.permute.xlu1 %v1881_v30 }
  0x4d   :  { %126 = vperm.xlu1 %1702, %v1934_v2  }
  0x51   :  { %1703 = vset.pattern.permute.xlu1 %v1882_v31 }
  0x52   :  { %1056 = vperm.xlu1 %1703, %v1934_v2  }
  0x56   :  { %1705 = vset.pattern.permute.xlu1 %v1883_v32 }
  0x57   :  { %1073 = vperm.xlu1 %1705, %v1934_v2  }
  0x5b   :  { %1706 = vset.pattern.permute.xlu1 %v1884_v33 }
  0x5c   :  { %162 = vperm.xlu1 %1706, %v1934_v2  }
  0x60   :  { %1708 = vset.pattern.permute.xlu1 %v1885_v34 }
  0x61   :  { %1107 = vperm.xlu1 %1708, %v1934_v2  }
  0x65   :  { %1709 = vset.pattern.permute.xlu1 %v1886_v35 }
  0x66   :  { %671 = vperm.xlu1 %1709, %v1934_v2  }
  0x6a   :  { %1711 = vset.pattern.permute.xlu1 %v1887_v36 }
  0x81   :  { %v367_v45 = vpop.permute.xlu0 %366  ;;  %v401_v46 = vpop.permute.xlu1 %400 }
  0x82   :  { %v369_v47 = vmul.f32 %v367_v45, %v1987_v41  ;;  %v370_v48 = vmul.f32 %v367_v45, %v1992_v42  ;;  %v403_v58 = vmul.f32 %v401_v46, %v1987_v41  ;;  %v404_v59 = vmul.f32 %v401_v46, %v1992_v42 }
  0x84   :  { %375 = vrot.lane.b32.xlu1 %v370_v48, %s1888_s18  ;;  %373 = vrot.lane.b32.xlu0 %v369_v47, %s1888_s18 }
  0x86   :  { %v384_v51 = vpop.permute.xlu0 %383  ;;  %v418_v52 = vpop.permute.xlu1 %417 }
  0x87   :  { %v386_v54 = vmul.f32 %v384_v51, %v1987_v41  ;;  %v387_v55 = vmul.f32 %v384_v51, %v1992_v42  ;;  %v420_v62 = vmul.f32 %v418_v52, %v1987_v41  ;;  %v421_v63 = vmul.f32 %v418_v52, %v1992_v42 }
  0x89   :  { %392 = vrot.lane.b32.xlu1 %v387_v55, %s1889_s1  ;;  %390 = vrot.lane.b32.xlu0 %v386_v54, %s1889_s1 }
  0x8b   :  { %v435_v60 = vpop.permute.xlu1 %434  ;;  %v452_v4 = vpop.permute.xlu0 %451 }
  0x8c   :  { %v437_v5 = vmul.f32 %v435_v60, %v1987_v41  ;;  %v438_v6 = vmul.f32 %v435_v60, %v1992_v42  ;;  %v454_v10 = vmul.f32 %v452_v4, %v1987_v41  ;;  %v455_v18 = vmul.f32 %v452_v4, %v1992_v42 }
  0x8d   :  { %409 = vrot.lane.b32.xlu1 %v404_v59, %s1890_s27  ;;  %407 = vrot.lane.b32.xlu0 %v403_v58, %s1890_s27 }
  0x90   :  { %v469_v3 = vpop.permute.xlu1 %468  ;;  %v678_v12 = vpop.permute.xlu0 %677 }
  0x91   :  { %426 = vrot.lane.b32.xlu1 %v421_v63, %s1891_s8  ;;  %424 = vrot.lane.b32.xlu0 %v420_v62, %s1891_s8  ;;  %v680_v15 = vmul.f32 %v678_v12, %v1987_v41  ;;  %v471_v20 = vmul.f32 %v469_v3, %v1987_v41  ;;  %v472_v26 = vmul.f32 %v469_v3, %v1992_v42 }
  0x92   :  { %v681_v31 = vmul.f32 %v678_v12, %v1992_v42 }
  0x95   :  { %443 = vrot.lane.b32.xlu1 %v438_v6, %s1892_s13  ;;  %441 = vrot.lane.b32.xlu0 %v437_v5, %s1892_s13  ;;  %v486_v9 = vpop.permute.xlu1 %485  ;;  %v729_v25 = vpop.permute.xlu0 %728 }
  0x96   :  { %v489_v11 = vmul.f32 %v486_v9, %v1992_v42  ;;  %v488_v29 = vmul.f32 %v486_v9, %v1987_v41  ;;  %v731_v30 = vmul.f32 %v729_v25, %v1987_v41  ;;  %v732_v43 = vmul.f32 %v729_v25, %v1992_v42 }
  0x99   :  { %458 = vrot.lane.b32.xlu1 %v454_v10, %s1893_s19  ;;  %494 = vrot.lane.b32.xlu0 %v489_v11, %s1894_s20 }
  0x9a   :  { %v695_v16 = vpop.permute.xlu1 %694  ;;  %v780_v37 = vpop.permute.xlu0 %779 }
  0x9b   :  { %v697_v21 = vmul.f32 %v695_v16, %v1987_v41  ;;  %v698_v35 = vmul.f32 %v695_v16, %v1992_v42  ;;  %v782_v39 = vmul.f32 %v780_v37, %v1987_v41  ;;  %v783_v52 = vmul.f32 %v780_v37, %v1992_v42 }
  0x9d   :  { %460 = vrot.lane.b32.xlu1 %v455_v18, %s1893_s19  ;;  %684 = vrot.lane.b32.xlu0 %v680_v15, %s1888_s18 }
  0x9f   :  { %v712_v23 = vpop.permute.xlu1 %711  ;;  %v37_v45 = vpop.permute.xlu0 %36 }
  0xa0   :  { %v714_v24 = vmul.f32 %v712_v23, %v1987_v41  ;;  %v715_v38 = vmul.f32 %v712_v23, %v1992_v42  ;;  %v40_v51 = vmul.f32 %v37_v45, %v1992_v42  ;;  %v39_v61 = vmul.f32 %v37_v45, %v1987_v41 }
  0xa1   :  { %475 = vrot.lane.b32.xlu1 %v471_v20, %s1895_s28  ;;  %701 = vrot.lane.b32.xlu0 %v697_v21, %s1889_s1 }
  0xa4   :  { %v746_v27 = vpop.permute.xlu1 %745  ;;  %v55_v48 = vpop.permute.xlu0 %54 }
  0xa5   :  { %477 = vrot.lane.b32.xlu1 %v472_v26, %s1895_s28  ;;  %718 = vrot.lane.b32.xlu0 %v714_v24, %s1890_s27  ;;  %v748_v32 = vmul.f32 %v746_v27, %v1987_v41  ;;  %v749_v47 = vmul.f32 %v746_v27, %v1992_v42  ;;  %v58_v53 = vmul.f32 %v55_v48, %v1992_v42  ;;  %v1784_v24 = vld [vmem:[%s2538_s2 + $0x20] ss:$8 sps:$4 sm:$0xff]  }
  0xa6   :  { %v57_v63 = vmul.f32 %v55_v48, %v1987_v41  ;;  %310 = vmatpush1.bf16.msra.mxu1 %v1784_v24 }
  0xa9   :  { %492 = vrot.lane.b32.xlu1 %v488_v29, %s1894_s20  ;;  %735 = vrot.lane.b32.xlu0 %v731_v30, %s1891_s8  ;;  %v763_v33 = vpop.permute.xlu1 %762  ;;  %v989_v54 = vpop.permute.xlu0 %988  ;;  %v1785_v29 = vld [vmem:[%s2538_s2 + $0x34] ss:$8 sps:$4 sm:$0xff]   ;;  %v1790_v30 = vld [vmem:[%s2538_s2 + $0x30] ss:$8 sps:$4 sm:$0xff]  }
  0xaa   :  { %v765_v36 = vmul.f32 %v763_v33, %v1987_v41  ;;  %v766_v50 = vmul.f32 %v763_v33, %v1992_v42  ;;  %v992_v57 = vmul.f32 %v989_v54, %v1992_v42  ;;  %v991_v3 = vmul.f32 %v989_v54, %v1987_v41  ;;  %311 = vmatprep.subr.bf16.mxu1 %v1785_v29  ;;  %v1814_v54 = vld [vmem:[%s2538_s2 + $0x70] ss:$8 sps:$4 sm:$0xff]  }
  0xab   :  { %312 = vmatpush1.bf16.msra.mxu1 %v1790_v30 }
  0xad   :  { %686 = vrot.lane.b32.xlu1 %v681_v31, %s1888_s18  ;;  %752 = vrot.lane.b32.xlu0 %v748_v32, %s1892_s13 }
  0xae   :  { %v797_v40 = vpop.permute.xlu1 %796  ;;  %v91_v62 = vpop.permute.xlu0 %90 }
  0xaf   :  { %v799_v44 = vmul.f32 %v797_v40, %v1987_v41  ;;  %v800_v56 = vmul.f32 %v797_v40, %v1992_v42  ;;  %v94_v0 = vmul.f32 %v91_v62, %v1992_v42  ;;  %v93_v11 = vmul.f32 %v91_v62, %v1987_v41 }
  0xb1   :  { %703 = vrot.lane.b32.xlu1 %v698_v35, %s1889_s1  ;;  %769 = vrot.lane.b32.xlu0 %v765_v36, %s1893_s19  ;;  %v1791_v35 = vld [vmem:[%s2538_s2 + $0x44] ss:$8 sps:$4 sm:$0xff]   ;;  %v1796_v36 = vld [vmem:[%s2538_s2 + $0x40] ss:$8 sps:$4 sm:$0xff]  }
  0xb2   :  { %313 = vmatprep.subr.bf16.mxu1 %v1791_v35 }
  0xb3   :  { %v2099_v46 = vpop.permute.xlu1 %360  ;;  %v1040_v6 = vpop.permute.xlu0 %1039  ;;  %314 = vmatpush1.bf16.msra.mxu1 %v1796_v36 }
  0xb4   :  { %v1043_v8 = vmul.f32 %v1040_v6, %v1992_v42  ;;  %v1042_v26 = vmul.f32 %v1040_v6, %v1987_v41 }
  0xb5   :  { %720 = vrot.lane.b32.xlu1 %v715_v38, %s1890_s27  ;;  %786 = vrot.lane.b32.xlu0 %v782_v39, %s1895_s28  ;;  %v1797_v39 = vld [vmem:[%s2538_s2 + $0x54] ss:$8 sps:$4 sm:$0xff]  }
  0xb6   :  { %315 = vmatprep.subr.bf16.mxu1 %v1797_v39 }
  0xb8   :  { %v73_v49 = vpop.permute.xlu1 %72  ;;  %v145_v18 = vpop.permute.xlu0 %144 }
  0xb9   :  { %737 = vrot.lane.b32.xlu1 %v732_v43, %s1891_s8  ;;  %803 = vrot.lane.b32.xlu0 %v799_v44, %s1894_s20  ;;  %v76_v59 = vmul.f32 %v73_v49, %v1992_v42  ;;  %v75_v7 = vmul.f32 %v73_v49, %v1987_v41  ;;  %v148_v21 = vmul.f32 %v145_v18, %v1992_v42  ;;  %v1802_v44 = vld [vmem:[%s2538_s2 + $0x50] ss:$8 sps:$4 sm:$0xff]   ;;  %v1803_v49 = vld [vmem:[%s2538_s2 + $0x64] ss:$8 sps:$4 sm:$0xff]  }
  0xba   :  { %316 = vmatpush1.bf16.msra.mxu1 %v1802_v44  ;;  %v1743_v44 = vld [vmem:[%s2538_s2 + $0x140] ss:$8 sps:$4 sm:$0xff]  }
  0xbb   :  { %317 = vmatprep.subr.bf16.mxu1 %v1803_v49  ;;  %v1748_v49 = vld [vmem:[%s2538_s2 + $0x154] ss:$8 sps:$4 sm:$0xff]  }
  0xbd   :  { %754 = vrot.lane.b32.xlu1 %v749_v47, %s1892_s13  ;;  %30 = vperm.xlu0 %1710, %v1934_v2   ;;  %v1006_v55 = vpop.permute.xlu1 %1005  ;;  %v1091_v32 = vpop.permute.xlu0 %1090  ;;  %v147_v47 = vmul.f32 %v145_v18, %v1987_v41 }
  0xbe   :  { %v1008_v10 = vmul.f32 %v1006_v55, %v1987_v41  ;;  %v1094_v38 = vmul.f32 %v1091_v32, %v1992_v42  ;;  %v1093_v62 = vmul.f32 %v1091_v32, %v1987_v41 }
  0xc1   :  { %771 = vrot.lane.b32.xlu1 %v766_v50, %s1893_s19  ;;  %45 = vrot.lane.b32.xlu0 %v40_v51, %s1888_s18  ;;  %v1808_v50 = vld [vmem:[%s2538_s2 + $0x60] ss:$8 sps:$4 sm:$0xff]  }
  0xc2   :  { %1712 = vset.pattern.permute.xlu0 %v1885_v34  ;;  %v1023_v58 = vpop.permute.xlu1 %1022  ;;  %v1009_v34 = vmul.f32 %v1006_v55, %v1992_v42  ;;  %318 = vmatpush1.bf16.msra.mxu1 %v1808_v50  ;;  %v1746_v50 = vld [vmem:[%s2538_s2 + $0x150] ss:$8 sps:$4 sm:$0xff]  }
  0xc3   :  { %v1025_v20 = vmul.f32 %v1023_v58, %v1987_v41 }
  0xc5   :  { %788 = vrot.lane.b32.xlu1 %v783_v52, %s1895_s28  ;;  %63 = vrot.lane.b32.xlu0 %v58_v53, %s1889_s1  ;;  %v1809_v53 = vld [vmem:[%s2538_s2 + $0x74] ss:$8 sps:$4 sm:$0xff]  }
  0xc6   :  { %319 = vmatprep.subr.bf16.mxu1 %v1809_v53 }
  0xc7   :  { %v109_v60 = vpop.permute.xlu1 %108  ;;  %320 = vmatpush1.bf16.msra.mxu1 %v1814_v54  ;;  %v1749_v54 = vld [vmem:[%s2538_s2 + $0x160] ss:$8 sps:$4 sm:$0xff]  }
  0xc8   :  { %v112_v5 = vmul.f32 %v109_v60, %v1992_v42  ;;  %v111_v25 = vmul.f32 %v109_v60, %v1987_v41 }
  0xc9   :  { %805 = vrot.lane.b32.xlu1 %v800_v56, %s1894_s20  ;;  %997 = vrot.lane.b32.xlu0 %v992_v57, %s1888_s18 }
  0xcc   :  { %v127_v1 = vpop.permute.xlu1 %126 }
  0xcd   :  { %982 = vperm.xlu1 %1711, %v1934_v2   ;;  %81 = vrot.lane.b32.xlu0 %v76_v59, %s1890_s27  ;;  %v1026_v2 = vmul.f32 %v1023_v58, %v1992_v42  ;;  %v130_v12 = vmul.f32 %v127_v1, %v1992_v42  ;;  %v129_v37 = vmul.f32 %v127_v1, %v1987_v41  ;;  %v1815_v58 = vld [vmem:[%s2538_s2 + $0x84] ss:$8 sps:$4 sm:$0xff]   ;;  %v1820_v59 = vld [vmem:[%s2538_s2 + $0x80] ss:$8 sps:$4 sm:$0xff]  }
  0xce   :  { %321 = vmatprep.subr.bf16.mxu1 %v1815_v58 }
  0xcf   :  { %322 = vmatpush1.bf16.msra.mxu1 %v1820_v59 }
  0xd1   :  { %43 = vrot.lane.b32.xlu1 %v39_v61, %s1888_s18  ;;  %1014 = vrot.lane.b32.xlu0 %v1009_v34, %s1889_s1  ;;  %v2132_v4 = vpop.permute.xlu1 %1056 }
  0xd2   :  { %v1060_v16 = vmul.f32 %v2132_v4, %v1992_v42  ;;  %v1059_v45 = vmul.f32 %v2132_v4, %v1987_v41 }
  0xd5   :  { %61 = vrot.lane.b32.xlu1 %v57_v63, %s1889_s1  ;;  %99 = vrot.lane.b32.xlu0 %v94_v0, %s1891_s8  ;;  %v1821_v63 = vld [vmem:[%s2538_s2 + $0x94] ss:$8 sps:$4 sm:$0xff]   ;;  %v1826_v0 = vld [vmem:[%s2538_s2 + $0x90] ss:$8 sps:$4 sm:$0xff]  }
  0xd6   :  { %v2141_v9 = vpop.permute.xlu1 %1073  ;;  %323 = vmatprep.subr.bf16.mxu1 %v1821_v63 }
  0xd7   :  { %v1077_v27 = vmul.f32 %v2141_v9, %v1992_v42  ;;  %v1076_v55 = vmul.f32 %v2141_v9, %v1987_v41  ;;  %324 = vmatpush1.bf16.msra.mxu1 %v1826_v0  ;;  %v363_v9 = vmul.f32 %v2099_v46, %v1987_v41  ;;  %v1760_v0 = vld [vmem:[%s2538_s2 + $0x194] ss:$8 sps:$4 sm:$0xff]  }
  0xd8   :  { %1411 = vmatprep.subr.bf16.mxu1 %v1879_v28 }
  0xd9   :  { %995 = vrot.lane.b32.xlu1 %v991_v3, %s1888_s18  ;;  %1031 = vrot.lane.b32.xlu0 %v1026_v2, %s1890_s27  ;;  %v364_v2 = vmul.f32 %v2099_v46, %v1992_v42 }
  0xdb   :  { %v2154_v15 = vpop.permute.xlu1 %162 }
  0xdc   :  { %v166_v33 = vmul.f32 %v2154_v15, %v1992_v42  ;;  %v165_v60 = vmul.f32 %v2154_v15, %v1987_v41 }
  0xdd   :  { %79 = vrot.lane.b32.xlu1 %v75_v7, %s1890_s27  ;;  %117 = vrot.lane.b32.xlu0 %v112_v5, %s1892_s13 }
  0xe0   :  { %v2173_v23 = vpop.permute.xlu1 %1107 }
  0xe1   :  { %1012 = vrot.lane.b32.xlu1 %v1008_v10, %s1889_s1  ;;  %1048 = vrot.lane.b32.xlu0 %v1043_v8, %s1891_s8  ;;  %v1111_v48 = vmul.f32 %v2173_v23, %v1992_v42  ;;  %v1110_v4 = vmul.f32 %v2173_v23, %v1987_v41 }
  0xe5   :  { %97 = vrot.lane.b32.xlu1 %v93_v11, %s1891_s8  ;;  %135 = vrot.lane.b32.xlu0 %v130_v12, %s1893_s19  ;;  %v2190_v31 = vpop.permute.xlu1 %671 }
  0xe9   :  { %1029 = vrot.lane.b32.xlu1 %v1025_v20, %s1890_s27  ;;  %1065 = vrot.lane.b32.xlu0 %v1060_v16, %s1892_s13 }
  0xed   :  { %115 = vrot.lane.b32.xlu1 %v111_v25, %s1892_s13  ;;  %153 = vrot.lane.b32.xlu0 %v148_v21, %s1895_s28 }
  0xf1   :  { %1046 = vrot.lane.b32.xlu1 %v1042_v26, %s1891_s8  ;;  %1082 = vrot.lane.b32.xlu0 %v1077_v27, %s1893_s19 }
  0xf5   :  { %133 = vrot.lane.b32.xlu1 %v129_v37, %s1893_s19  ;;  %171 = vrot.lane.b32.xlu0 %v166_v33, %s1894_s20 }
  0xf6   :  { %v376_v40 = vpop.permute.xlu1 %375  ;;  %v374_v43 = vpop.permute.xlu0 %373 }
  0xf7   :  { %v381_v7 = vadd.f32 %v376_v40, %v364_v2  ;;  %v377_v8 = vsel %vm47_vm0, %v374_v43, %v376_v40 }
  0xf8   :  { %v380_v12 = vadd.f32 %v377_v8, %v363_v9 }
  0xf9   :  { %1063 = vrot.lane.b32.xlu1 %v1059_v45, %s1892_s13  ;;  %1099 = vrot.lane.b32.xlu0 %v1094_v38, %s1895_s28 }
  0xfb   :  { %v393_v51 = vpop.permute.xlu1 %392  ;;  %v391_v52 = vpop.permute.xlu0 %390 }
  0xfc   :  { %v398_v10 = vadd.f32 %v393_v51, %v381_v7  ;;  %v394_v11 = vsel %vm65_vm1, %v391_v52, %v393_v51  ;;  %v1751_v52 = vld [vmem:[%s2538_s2 + $0x164] ss:$8 sps:$4 sm:$0xff]  }
  0xfd   :  { %151 = vrot.lane.b32.xlu1 %v147_v47, %s1895_s28  ;;  %1116 = vrot.lane.b32.xlu0 %v1111_v48, %s1894_s20  ;;  %v397_v17 = vadd.f32 %v394_v11, %v380_v12  ;;  %v1763_v7 = vld [vmem:[%s2538_s2 + $0x1a4] ss:$8 sps:$4 sm:$0xff]  }
  0xff   :  { %v410_v56 = vpop.permute.xlu1 %409  ;;  %v408_v57 = vpop.permute.xlu0 %407 }
 0x100   :  { %v415_v15 = vadd.f32 %v410_v56, %v398_v10  ;;  %v411_v16 = vsel %vm83_vm2, %v408_v57, %v410_v56  ;;  %v1754_v56 = vld [vmem:[%s2538_s2 + $0x174] ss:$8 sps:$4 sm:$0xff]   ;;  %v1752_v57 = vld [vmem:[%s2538_s2 + $0x170] ss:$8 sps:$4 sm:$0xff]  }
 0x101   :  { %1080 = vrot.lane.b32.xlu1 %v1076_v55, %s1893_s19  ;;  %v414_v46 = vadd.f32 %v411_v16, %v397_v17 }
 0x103   :  { %v427_v61 = vpop.permute.xlu1 %426  ;;  %v425_v34 = vpop.permute.xlu0 %424 }
 0x104   :  { %v432_v18 = vadd.f32 %v427_v61, %v415_v15  ;;  %v428_v19 = vsel %vm101_vm3, %v425_v34, %v427_v61  ;;  %v675_v61 = vmul.f32 %v2190_v31, %v1992_v42  ;;  %v1758_v42 = vld [vmem:[%s2538_s2 + $0x190] ss:$8 sps:$4 sm:$0xff]   ;;  %v1766_v15 = vld [vmem:[%s2538_s2 + $0x1b4] ss:$8 sps:$4 sm:$0xff]  }
 0x105   :  { %169 = vrot.lane.b32.xlu1 %v165_v60, %s1894_s20  ;;  %v431_v24 = vadd.f32 %v428_v19, %v414_v46  ;;  %v1757_v60 = vld [vmem:[%s2538_s2 + $0x184] ss:$8 sps:$4 sm:$0xff]  }
 0x107   :  { %v444_v1 = vpop.permute.xlu1 %443  ;;  %v442_v3 = vpop.permute.xlu0 %441 }
 0x108   :  { %v449_v22 = vadd.f32 %v444_v1, %v432_v18  ;;  %v445_v23 = vsel %vm119_vm4, %v442_v3, %v444_v1 }
 0x109   :  { %1097 = vrot.lane.b32.xlu1 %v1093_v62, %s1895_s28  ;;  %v448_v27 = vadd.f32 %v445_v23, %v431_v24  ;;  %v1755_v62 = vld [vmem:[%s2538_s2 + $0x180] ss:$8 sps:$4 sm:$0xff]   ;;  %v1769_v23 = vld [vmem:[%s2538_s2 + $0x1c4] ss:$8 sps:$4 sm:$0xff]  }
 0x10b   :  { %v459_v5 = vpop.permute.xlu1 %458  ;;  %v495_v6 = vpop.permute.xlu0 %494 }
 0x10d   :  { %1114 = vrot.lane.b32.xlu1 %v1110_v4, %s1894_s20 }
 0x10f   :  { %v461_v13 = vpop.permute.xlu1 %460  ;;  %v2263_v14 = vpop.permute.xlu0 %684 }
 0x110   :  { %v462_v25 = vsel %vm137_vm5, %v459_v5, %v461_v13  ;;  %v466_v26 = vadd.f32 %v461_v13, %v449_v22  ;;  %v674_v5 = vmul.f32 %v2190_v31, %v1987_v41  ;;  %v1761_v41 = vld [vmem:[%s2538_s2 + $0x1a0] ss:$8 sps:$4 sm:$0xff]  }
 0x111   :  { %v465_v35 = vadd.f32 %v462_v25, %v448_v27 }
 0x113   :  { %v476_v20 = vpop.permute.xlu1 %475  ;;  %v2267_v21 = vpop.permute.xlu0 %701 }
 0x117   :  { %v478_v29 = vpop.permute.xlu1 %477  ;;  %v719_v33 = vpop.permute.xlu0 %718 }
 0x118   :  { %v479_v30 = vsel %vm155_vm6, %v476_v20, %v478_v29  ;;  %v483_v32 = vadd.f32 %v478_v29, %v466_v26  ;;  %v1764_v20 = vld [vmem:[%s2538_s2 + $0x1b0] ss:$8 sps:$4 sm:$0xff]  }
 0x119   :  { %v482_v37 = vadd.f32 %v479_v30, %v465_v35  ;;  %v1772_v35 = vld [vmem:[%s2538_s2 + $0x1d4] ss:$8 sps:$4 sm:$0xff]  }
 0x11a   :  { %v500_v36 = vadd.f32 %v495_v6, %v483_v32  ;;  %v1767_v32 = vld [vmem:[%s2538_s2 + $0x1c0] ss:$8 sps:$4 sm:$0xff]  }
 0x11b   :  { %v493_v38 = vpop.permute.xlu1 %492  ;;  %v736_v45 = vpop.permute.xlu0 %735 }
 0x11c   :  { %v496_v39 = vsel %vm173_vm7, %v493_v38, %v495_v6  ;;  %v502_v40 = vpack.c.bf16 %v500_v36, %v500_v36 }
 0x11d   :  { %v499_v43 = vadd.f32 %v496_v39, %v482_v37  ;;  %v1770_v39 = vld [vmem:[%s2538_s2 + $0x1d0] ss:$8 sps:$4 sm:$0xff]  }
 0x11e   :  { %1522 = vmatprep.mubr.msk.bf16.mxu0 %vm301_vm8, %v502_v40 }
 0x11f   :  { %v501_v47 = vpack.c.bf16 %v499_v43, %v499_v43  ;;  %v687_v48 = vpop.permute.xlu1 %686  ;;  %v753_v53 = vpop.permute.xlu0 %752  ;;  %v1783_v43 = vld [vmem:[%s2538_s2 + $0x1e4] ss:$8 sps:$4 sm:$0xff]  }
 0x120   :  { %v692_v34 = vadd.f32 %v687_v48, %v675_v61  ;;  %v688_v2 = vsel %vm47_vm0, %v2263_v14, %v687_v48  ;;  %v1789_v48 = vld [vmem:[%s2538_s2 + $0x1f4] ss:$8 sps:$4 sm:$0xff]  }
 0x121   :  { %660 = vmatmul.mubr.bf16.vlgmr.msra.gmra.mrb[0].mxu0 %v501_v47  ;;  %v691_v10 = vadd.f32 %v688_v2, %v674_v5  ;;  %v1850_v5 = vld [vmem:[%s2539_s0 + $0x8] sm:$0xff] }
 0x122   :  { %939 = vmatpush1.bf16.msra.mxu0 %v1743_v44 }
 0x123   :  { %v704_v51 = vpop.permute.xlu1 %703  ;;  %940 = vmatprep.subr.bf16.mxu0 %v1748_v49  ;;  %v770_v58 = vpop.permute.xlu0 %769 }
 0x124   :  { %v709_v1 = vadd.f32 %v704_v51, %v692_v34  ;;  %v705_v8 = vsel %vm65_vm1, %v2267_v21, %v704_v51  ;;  %v1795_v51 = vld [vmem:[%s2538_s2 + $0x204] ss:$8 sps:$4 sm:$0xff]   ;;  %v1805_v34 = vld [vmem:[%s2538_s2 + $0x220] ss:$8 sps:$4 sm:$0xff]  }
 0x125   :  { %v708_v31 = vadd.f32 %v705_v8, %v691_v10  ;;  %v1823_v10 = vld [vmem:[%s2538_s2 + $0x250] ss:$8 sps:$4 sm:$0xff]  }
 0x126   :  { %941 = vmatpush1.bf16.msra.mxu0 %v1746_v50  ;;  %v1787_v50 = vld [vmem:[%s2538_s2 + $0x1f0] ss:$8 sps:$4 sm:$0xff]  }
 0x127   :  { %v721_v55 = vpop.permute.xlu1 %720  ;;  %942 = vmatprep.subr.bf16.mxu0 %v1751_v52  ;;  %v787_v3 = vpop.permute.xlu0 %786 }
 0x128   :  { %v726_v4 = vadd.f32 %v721_v55, %v709_v1  ;;  %v722_v11 = vsel %vm83_vm2, %v719_v33, %v721_v55  ;;  %v1801_v55 = vld [vmem:[%s2538_s2 + $0x214] ss:$8 sps:$4 sm:$0xff]   ;;  %v1811_v1 = vld [vmem:[%s2538_s2 + $0x230] ss:$8 sps:$4 sm:$0xff]  }
 0x129   :  { %v725_v18 = vadd.f32 %v722_v11, %v708_v31  ;;  %v1827_v31 = vld [vmem:[%s2538_s2 + $0x260] ss:$8 sps:$4 sm:$0xff]  }
 0x12a   :  { %943 = vmatpush1.bf16.msra.mxu0 %v1749_v54  ;;  %v1793_v54 = vld [vmem:[%s2538_s2 + $0x200] ss:$8 sps:$4 sm:$0xff]  }
 0x12b   :  { %v738_v59 = vpop.permute.xlu1 %737  ;;  %944 = vmatprep.subr.bf16.mxu0 %v1754_v56  ;;  %v804_v13 = vpop.permute.xlu0 %803 }
 0x12c   :  { %v743_v9 = vadd.f32 %v738_v59, %v726_v4  ;;  %v739_v16 = vsel %vm101_vm3, %v736_v45, %v738_v59  ;;  %v1781_v45 = vld [vmem:[%s2538_s2 + $0x1e0] ss:$8 sps:$4 sm:$0xff]   ;;  %v1807_v59 = vld [vmem:[%s2538_s2 + $0x224] ss:$8 sps:$4 sm:$0xff]  }
 0x12d   :  { %v742_v21 = vadd.f32 %v739_v16, %v725_v18 }
 0x12e   :  { %945 = vmatpush1.bf16.msra.mxu0 %v1752_v57 }
 0x12f   :  { %v755_v63 = vpop.permute.xlu1 %754  ;;  %946 = vmatprep.subr.bf16.mxu0 %v1757_v60 }
 0x130   :  { %v760_v12 = vadd.f32 %v755_v63, %v743_v9  ;;  %v756_v19 = vsel %vm119_vm4, %v753_v53, %v755_v63 }
 0x131   :  { %v759_v27 = vadd.f32 %v756_v19, %v742_v21  ;;  %v1830_v19 = vld [vmem:[%s2538_s2 + $0x270] ss:$8 sps:$4 sm:$0xff]  }
 0x132   :  { %947 = vmatpush1.bf16.msra.mxu0 %v1755_v62  ;;  %v1813_v62 = vld [vmem:[%s2538_s2 + $0x234] ss:$8 sps:$4 sm:$0xff]  }
 0x133   :  { %v772_v6 = vpop.permute.xlu1 %771  ;;  %948 = vmatprep.subr.bf16.mxu0 %v1760_v0 }
 0x134   :  { %v777_v17 = vadd.f32 %v772_v6, %v760_v12  ;;  %v773_v24 = vsel %vm137_vm5, %v770_v58, %v772_v6  ;;  %v1799_v58 = vld [vmem:[%s2538_s2 + $0x210] ss:$8 sps:$4 sm:$0xff]   ;;  %v1829_v12 = vld [vmem:[%s2538_s2 + $0x264] ss:$8 sps:$4 sm:$0xff]  }
 0x135   :  { %v776_v33 = vadd.f32 %v773_v24, %v759_v27 }
 0x136   :  { %949 = vmatpush1.bf16.msra.mxu0 %v1758_v42  ;;  %v1817_v42 = vld [vmem:[%s2538_s2 + $0x240] ss:$8 sps:$4 sm:$0xff]  }
 0x137   :  { %v789_v14 = vpop.permute.xlu1 %788  ;;  %950 = vmatprep.subr.bf16.mxu0 %v1763_v7  ;;  %v1825_v7 = vld [vmem:[%s2538_s2 + $0x254] ss:$8 sps:$4 sm:$0xff]  }
 0x138   :  { %v794_v46 = vadd.f32 %v789_v14, %v777_v17  ;;  %v790_v29 = vsel %vm155_vm6, %v787_v3, %v789_v14  ;;  %v1819_v3 = vld [vmem:[%s2538_s2 + $0x244] ss:$8 sps:$4 sm:$0xff]  }
 0x139   :  { %v793_v38 = vadd.f32 %v790_v29, %v776_v33 }
 0x13a   :  { %951 = vmatpush1.bf16.msra.mxu0 %v1761_v41 }
 0x13b   :  { %v806_v22 = vpop.permute.xlu1 %805  ;;  %952 = vmatprep.subr.bf16.mxu0 %v1766_v15  ;;  %v1832_v15 = vld [vmem:[%s2538_s2 + $0x274] ss:$8 sps:$4 sm:$0xff]  }
 0x13c   :  { %v811_v25 = vadd.f32 %v806_v22, %v794_v46  ;;  %v2334_v26 = vpop.permute.xlu0 %30  ;;  %v807_v36 = vsel %vm173_vm7, %v804_v13, %v806_v22 }
 0x13d   :  { %v810_v40 = vadd.f32 %v807_v36, %v793_v38  ;;  %v34_v6 = vmul.f32 %v1850_v5, %v2334_v26 }
 0x13e   :  { %v813_v30 = vpack.c.bf16 %v811_v25, %v811_v25  ;;  %953 = vmatpush1.bf16.msra.mxu0 %v1764_v20 }
 0x13f   :  { %954 = vmatprep.subr.bf16.mxu0 %v1769_v23  ;;  %v812_v47 = vpack.c.bf16 %v810_v40, %v810_v40 }
 0x140   :  { %v2344_v37 = vpop.permute.xlu0 %45  ;;  %1563 = vmatprep.mubr.msk.bf16.mxu0 %vm301_vm8, %v813_v30 }
 0x141   :  { %v52_v11 = vadd.f32 %v2344_v37, %v34_v6 }
 0x142   :  { %955 = vmatpush1.bf16.msra.mxu0 %v1767_v32 }
 0x143   :  { %956 = vmatprep.subr.bf16.mxu0 %v1772_v35 }
 0x144   :  { %v2353_v44 = vpop.permute.xlu0 %63 }
 0x145   :  { %v70_v14 = vadd.f32 %v2353_v44, %v52_v11 }
 0x146   :  { %957 = vmatpush1.bf16.msra.mxu0 %v1770_v39 }
 0x147   :  { %1249 = vmatprep.subr.bf16.mxu0 %v1783_v43  ;;  %v1851_v43 = vld [vmem:[%s2539_s0] sm:$0xff] }
 0x148   :  { %v2361_v49 = vpop.permute.xlu0 %997 }
 0x149   :  { %971 = vmatmul.mubr.bf16.vlgmr.msra.gmra.mrb[0].mxu0 %v812_v47 }
 0x14a   :  { %1250 = vmatpush1.bf16.msra.mxu0 %v1781_v45  ;;  %v33_v45 = vmul.f32 %v1851_v43, %v2334_v26 }
 0x14b   :  { %1251 = vmatprep.subr.bf16.mxu0 %v1789_v48 }
 0x14c   :  { %v2369_v52 = vpop.permute.xlu1 %982  ;;  %v2371_v53 = vpop.permute.xlu0 %81 }
 0x14d   :  { %v986_v18 = vmul.f32 %v1850_v5, %v2369_v52  ;;  %v88_v46 = vadd.f32 %v2371_v53, %v70_v14 }
 0x14e   :  { %1252 = vmatpush1.bf16.msra.mxu0 %v1787_v50 }
 0x14f   :  { %1253 = vmatprep.subr.bf16.mxu0 %v1795_v51  ;;  %v1003_v22 = vadd.f32 %v2361_v49, %v986_v18 }
 0x150   :  { %v2379_v56 = vpop.permute.xlu0 %1014  ;;  %v44_v57 = vpop.permute.xlu1 %43 }
 0x151   :  { %v1020_v29 = vadd.f32 %v2379_v56, %v1003_v22  ;;  %v48_v38 = vsel %vm47_vm0, %v44_v57, %v2344_v37 }
 0x152   :  { %1254 = vmatpush1.bf16.msra.mxu0 %v1793_v54  ;;  %v51_v51 = vadd.f32 %v48_v38, %v33_v45  ;;  %v1843_v38 = vld [vmem:[%s2540_s4 + $0x50] sm:$0xff]   ;;  %v347_v45 = vlaneseq }
 0x153   :  { %1255 = vmatprep.subr.bf16.mxu0 %v1801_v55 }
 0x154   :  { %v2387_v60 = vpop.permute.xlu0 %99  ;;  %v62_v61 = vpop.permute.xlu1 %61 }
 0x155   :  { %v106_v23 = vadd.f32 %v2387_v60, %v88_v46  ;;  %v66_v47 = vsel %vm65_vm1, %v62_v61, %v2353_v44 }
 0x156   :  { %1256 = vmatpush1.bf16.msra.mxu0 %v1799_v58  ;;  %v69_v58 = vadd.f32 %v66_v47, %v51_v51  ;;  %v348_v47 = vshrl.u32 %v347_v45, 7 }
 0x157   :  { %1257 = vmatprep.subr.bf16.mxu0 %v1807_v59 }
 0x158   :  { %v2395_v63 = vpop.permute.xlu0 %1031  ;;  %v2397_v0 = vpop.permute.xlu1 %995 }
 0x159   :  { %v1037_v32 = vadd.f32 %v2395_v63, %v1020_v29  ;;  %v999_v44 = vsel %vm47_vm0, %v2397_v0, %v2361_v49  ;;  %v1837_v29 = vld [vmem:[%s2540_s4 + $0x20] sm:$0xff]  }
 0x15a   :  { %1258 = vmatpush1.bf16.msra.mxu0 %v1805_v34 }
 0x15b   :  { %1259 = vmatprep.subr.bf16.mxu0 %v1813_v62 }
 0x15c   :  { %v2405_v2 = vpop.permute.xlu0 %117  ;;  %v80_v4 = vpop.permute.xlu1 %79 }
 0x15d   :  { %v124_v24 = vadd.f32 %v2405_v2, %v106_v23  ;;  %v84_v37 = vsel %vm83_vm2, %v80_v4, %v2371_v53  ;;  %v985_v53 = vmul.f32 %v1851_v43, %v2369_v52 }
 0x15e   :  { %1260 = vmatpush1.bf16.msra.mxu0 %v1811_v1  ;;  %v87_v26 = vadd.f32 %v84_v37, %v69_v58 }
 0x15f   :  { %1261 = vmatprep.subr.bf16.mxu0 %v1819_v3  ;;  %v1002_v6 = vadd.f32 %v999_v44, %v985_v53 }
 0x160   :  { %v2417_v8 = vpop.permute.xlu0 %1048  ;;  %v1013_v9 = vpop.permute.xlu1 %1012 }
 0x161   :  { %v1054_v39 = vadd.f32 %v2417_v8, %v1037_v32  ;;  %v1839_v32 = vld [vmem:[%s2540_s4 + $0x30] sm:$0xff]  }
 0x162   :  { %1262 = vmatpush1.bf16.msra.mxu0 %v1817_v42  ;;  %v1016_v42 = vsel %vm65_vm1, %v1013_v9, %v2379_v56 }
 0x163   :  { %1263 = vmatprep.subr.bf16.mxu0 %v1825_v7  ;;  %v1019_v0 = vadd.f32 %v1016_v42, %v1002_v6 }
 0x164   :  { %v136_v13 = vpop.permute.xlu0 %135  ;;  %v98_v41 = vpop.permute.xlu1 %97 }
 0x165   :  { %v142_v30 = vadd.f32 %v136_v13, %v124_v24  ;;  %v102_v59 = vsel %vm101_vm3, %v98_v41, %v2387_v60  ;;  %v1835_v24 = vld [vmem:[%s2540_s4 + $0x10] sm:$0xff]  }
 0x166   :  { %1264 = vmatpush1.bf16.msra.mxu0 %v1823_v10  ;;  %v105_v4 = vadd.f32 %v102_v59, %v87_v26 }
 0x167   :  { %1265 = vmatprep.subr.bf16.mxu0 %v1829_v12 }
 0x168   :  { %v1066_v16 = vpop.permute.xlu0 %1065  ;;  %v1030_v17 = vpop.permute.xlu1 %1029 }
 0x169   :  { %v1071_v48 = vadd.f32 %v1066_v16, %v1054_v39  ;;  %v1033_v11 = vsel %vm83_vm2, %v1030_v17, %v2395_v63  ;;  %v1844_v39 = vld [vmem:[%s2540_s4 + $0x58] sm:$0xff]  }
 0x16a   :  { %1266 = vmatpush1.bf16.msra.mxu0 %v1827_v31  ;;  %v1036_v12 = vadd.f32 %v1033_v11, %v1019_v0 }
 0x16b   :  { %1267 = vmatprep.subr.bf16.mxu0 %v1832_v15  ;;  %v1833_v15 = vld [vmem:[%s2540_s4] sm:$0xff]  }
 0x16c   :  { %v154_v20 = vpop.permute.xlu0 %153  ;;  %v116_v21 = vpop.permute.xlu1 %115 }
 0x16d   :  { %v160_v33 = vadd.f32 %v154_v20, %v142_v30  ;;  %v120_v61 = vsel %vm119_vm4, %v116_v21, %v2405_v2  ;;  %v1838_v30 = vld [vmem:[%s2540_s4 + $0x28] sm:$0xff]  }
 0x16e   :  { %1268 = vmatpush1.bf16.msra.mxu0 %v1830_v19  ;;  %v123_v7 = vadd.f32 %v120_v61, %v105_v4 }
 0x170   :  { %v1083_v25 = vpop.permute.xlu0 %1082  ;;  %v1047_v27 = vpop.permute.xlu1 %1046 }
 0x171   :  { %v1088_v57 = vadd.f32 %v1083_v25, %v1071_v48  ;;  %v1050_v52 = vsel %vm101_vm3, %v1047_v27, %v2417_v8  ;;  %v1836_v27 = vld [vmem:[%s2540_s4 + $0x18] sm:$0xff]   ;;  %v349_v48 = vsub.s32 0, %v348_v47 }
 0x172   :  { %v1053_v31 = vadd.f32 %v1050_v52, %v1036_v12 }
 0x174   :  { %v172_v35 = vpop.permute.xlu0 %171  ;;  %v134_v36 = vpop.permute.xlu1 %133 }
 0x175   :  { %v178_v40 = vadd.f32 %v172_v35, %v160_v33  ;;  %v138_v60 = vsel %vm137_vm5, %v134_v36, %v136_v13  ;;  %v1840_v33 = vld [vmem:[%s2540_s4 + $0x38] sm:$0xff]   ;;  %v1842_v36 = vld [vmem:[%s2540_s4 + $0x48] sm:$0xff]  }
 0x176   :  { %v141_v2 = vadd.f32 %v138_v60, %v123_v7 }
 0x177   :  { %v180_v50 = vpack.c.bf16 %v178_v40, %v178_v40  ;;  %v1845_v40 = vld [vmem:[%s2540_s4 + $0x60] ss:$0 sps:$4 sm:$0xff]  }
 0x178   :  { %v1100_v54 = vpop.permute.xlu0 %1099  ;;  %v1064_v55 = vpop.permute.xlu1 %1063  ;;  %v1409_v43 = vsel %vm1407_vm9, %v1845_v40, 0 }
 0x179   :  { %1481 = vmatprep.mubr.msk.bf16.mxu1 %vm301_vm8, %v180_v50  ;;  %v1105_v34 = vadd.f32 %v1100_v54, %v1088_v57  ;;  %v1067_v13 = vsel %vm119_vm4, %v1064_v55, %v1066_v16  ;;  %v1834_v16 = vld [vmem:[%s2540_s4 + $0x8] sm:$0xff]   ;;  %v27_v50 = vld [vmem:[%s2541_s3] sm:$0x3] }
 0x17a   :  { %v1070_v17 = vadd.f32 %v1067_v13, %v1053_v31  ;;  %v350_v57 = vrot.slane %v27_v50, %v349_v48 }
 0x17c   :  { %v1117_v62 = vpop.permute.xlu0 %1116  ;;  %v152_v1 = vpop.permute.xlu1 %151 }
 0x17d   :  { %v1122_v3 = vadd.f32 %v1117_v62, %v1105_v34  ;;  %v156_v49 = vsel %vm155_vm6, %v152_v1, %v154_v20 }
 0x17e   :  { %v159_v56 = vadd.f32 %v156_v49, %v141_v2 }
 0x17f   :  { %v1124_v5 = vpack.c.bf16 %v1122_v3, %v1122_v3 }
 0x180   :  { %v1081_v10 = vpop.permute.xlu1 %1080 }
 0x181   :  { %1604 = vmatprep.mubr.msk.bf16.mxu0 %vm301_vm8, %v1124_v5  ;;  %v1084_v63 = vsel %vm137_vm5, %v1081_v10, %v1083_v25  ;;  %v1605_v5 = vld [vmem:[%s2542_s5] ss:$0 sm:$0xff] }
 0x182   :  { %v1087_v46 = vadd.f32 %v1084_v63, %v1070_v17 }
 0x184   :  { %v170_v9 = vpop.permute.xlu1 %169 }
 0x185   :  { %v174_v41 = vsel %vm173_vm7, %v170_v9, %v172_v35  ;;  %v1841_v35 = vld [vmem:[%s2540_s4 + $0x40] sm:$0xff]  }
 0x186   :  { %v177_v14 = vadd.f32 %v174_v41, %v159_v56 }
 0x188   :  { %v179_v18 = vpack.c.bf16 %v177_v14, %v177_v14  ;;  %v1098_v19 = vpop.permute.xlu1 %1097 }
 0x189   :  { %v1101_v8 = vsel %vm155_vm6, %v1098_v19, %v1100_v54  ;;  %v353_v54 = vsub.s32 1, %v348_v47 }
 0x18a   :  { %338 = vmatmul.mubr.bf16.vlgmr.msra.gmra.mrb[0].mxu1 %v179_v18  ;;  %v1104_v20 = vadd.f32 %v1101_v8, %v1087_v46 }
 0x18b   :  { %1412 = vmatpush1.bf16.msra.mxu1 %v1833_v15  ;;  %v354_v58 = vrot.slane %v27_v50, %v353_v54 }
 0x18c   :  { %v1115_v21 = vpop.permute.xlu1 %1114  ;;  %1413 = vmatprep.subr.bf16.mxu1 %v1879_v28 }
 0x18d   :  { %v1118_v22 = vsel %vm173_vm7, %v1115_v21, %v1117_v62 }
 0x18e   :  { %v1121_v23 = vadd.f32 %v1118_v22, %v1104_v20 }
 0x18f   :  { %1414 = vmatpush1.bf16.msra.mxu1 %v1834_v16 }
 0x190   :  { %v1123_v25 = vpack.c.bf16 %v1121_v23, %v1121_v23  ;;  %1415 = vmatprep.subr.bf16.mxu1 %v1879_v28 }
 0x192   :  { %1282 = vmatmul.mubr.bf16.vlgmr.msra.gmra.mrb[0].mxu0 %v1123_v25 }
 0x193   :  { %1416 = vmatpush1.bf16.msra.mxu1 %v1835_v24 }
 0x194   :  { %1417 = vmatprep.subr.bf16.mxu1 %v1879_v28 }
 0x197   :  { %1418 = vmatpush1.bf16.msra.mxu1 %v1836_v27 }
 0x198   :  { %1419 = vmatprep.subr.bf16.mxu1 %v1879_v28 }
 0x19b   :  { %1420 = vmatpush1.bf16.msra.mxu1 %v1837_v29 }
 0x19c   :  { %1421 = vmatprep.subr.bf16.mxu1 %v1879_v28 }
 0x19f   :  { %1422 = vmatpush1.bf16.msra.mxu1 %v1838_v30 }
 0x1a0   :  { %1423 = vmatprep.subr.bf16.mxu1 %v1879_v28 }
 0x1a3   :  { %1424 = vmatpush1.bf16.msra.mxu1 %v1839_v32 }
 0x1a4   :  { %1425 = vmatprep.subr.bf16.mxu1 %v1879_v28 }
 0x1a7   :  { %1426 = vmatpush1.bf16.msra.mxu1 %v1840_v33 }
 0x1a8   :  { %1427 = vmatprep.subr.bf16.mxu1 %v1879_v28 }
 0x1ab   :  { %1428 = vmatpush1.bf16.msra.mxu1 %v1841_v35 }
 0x1ac   :  { %1429 = vmatprep.subr.bf16.mxu1 %v1879_v28 }
 0x1af   :  { %1430 = vmatpush1.bf16.msra.mxu1 %v1842_v36 }
 0x1b0   :  { %1431 = vmatprep.subr.bf16.mxu1 %v1879_v28 }
 0x1b3   :  { %1432 = vmatpush1.bf16.msra.mxu1 %v1843_v38 }
 0x1b4   :  { %1433 = vmatprep.subr.bf16.mxu1 %v1879_v28 }
 0x1b7   :  { %1434 = vmatpush1.bf16.msra.mxu1 %v1844_v39 }
 0x1b8   :  { %1435 = vmatprep.subr.bf16.mxu1 %v1879_v28 }
 0x1bb   :  { %1436 = vmatpush1.bf16.msra.mxu1 %v1409_v43 }
 0x25d   :  { %v339_v51 = vpop.f32.mrb[0].mxu1 }
 0x25e   :  { %v341_v55 = vpop.f32.mrb[1].mxu1  ;;  %v357_v59 = vadd.f32 %v350_v57, %v339_v51 }
 0x25f   :  { %v343_v37 = vpop.f32.mrb[2].mxu1  ;;  %v358_v34 = vadd.f32 %v354_v58, %v341_v55 }
 0x260   :  { %v344_v28 = vpop.f32.mrb[3].mxu1 }
 0x265   :  { %v1283_v26 = vpop.f32.mrb[0].mxu0 }
 0x266   :  { %v1621_v62 = vadd.f32 %v1283_v26, %v357_v59  ;;  %v1285_v1 = vpop.f32.mrb[1].mxu0 }
 0x267   :  { %v1623_v44 = vadd.f32 %v1285_v1, %v358_v34  ;;  %v1287_v61 = vpop.f32.mrb[2].mxu0 }
 0x268   :  { %v1292_v3 = vmax.f32 %v1621_v62, 0.0  ;;  %v1288_v53 = vpop.f32.mrb[3].mxu0 }
 0x269   :  { %v1293_v4 = vmax.f32 %v1623_v44, 0.0 }
 0x26a   :  { %v1294_v60 = vpack.c.bf16 %v1292_v3, %v1292_v3 }
 0x26b   :  { %v1295_v42 = vpack.c.bf16 %v1293_v4, %v1293_v4 }
 0x26d   :  { %1619 = vmatprep.mubr.msk.bf16.mxu1 %vm1403_vm10, %v1295_v42 }
 0x26e   :  { %1444 = vmatmul.mubr.bf16.vlgmr.msra.gmra.mrb[4].mxu1 %v1294_v60 }
 0x341   :  { %v1445_v6 = vpop.f32.mrb[4].mxu1 }
 0x342   :  { %v1446_v7 = vadd.f32 %v1605_v5, %v1445_v6  ;;  %v1447_v10 = vpop.f32.mrb[5].mxu1 }
 0x343   :  { %v1448_v11 = vpop.f32.mrb[6].mxu1 }
 0x344   :  { %v1451_v49 = vsub.f32 0.0, %v1446_v7  ;;  %v1449_v0 = vpop.f32.mrb[7].mxu1 }
 0x346   :  { %v1452_v2 = vmul.f32 1.442695, %v1451_v49 }
 0x348   :  { %1846 = vpow2.f32 %v1452_v2 }
 0x352   :  { %v1847_v52 = vpop.eup %1846 }
 0x353   :  { %v1454_v12 = vadd.f32 1.0, %v1847_v52 }
 0x355   :  { %1848 = vrcp.f32 %v1454_v12 }
 0x35f   :  { %v1849_v56 = vpop.eup %1848 }
 0x360   :  { %1456 = vst [vmem:[%s2543_s6] sm:$0xff] %v1849_v56 }

</bundles_post_ra>
